<compile_context>
chip_gen: v5e
topology: v5e:2x2
jax: 0.10.0
libtpu: 0.0.40
codegen_flags: <defaults>
</compile_context>

<pallas_src>
import math

import jax
import jax.numpy as jnp
from jax.experimental import pallas as pl
from jax.experimental.pallas import tpu as pltpu

C1 = 0.01 ** 2
C2 = 0.03 ** 2
# Fold the 1/9 pool normalization: with un-normalized 3x3 sums S = 9 * mean,
#   n/d = [(2*Sx*Sy + 81*C1) * (18*Sxy - 2*Sx*Sy + 81*C2)]
#       / [(Sx^2 + Sy^2 + 81*C1) * (9*(Sxx+Syy) - (Sx^2+Sy^2) + 81*C2)]
# (the 1/81^2 factors cancel exactly).
_A1 = 81.0 * C1
_A2 = 81.0 * C2


def _cdiv(a, b):
    return -(-a // b)


# --------------------------------------------------------------------------
# Kernel: unpadded (TB, H, PW) blocks in, (TB, H, PW) SSIM loss out.
# PW = n_packed * plane_w when several planes are packed along the lane axis.
# --------------------------------------------------------------------------
def _make_ssim_kernel(plane_w: int, n_packed: int):
    def kernel(x_ref, y_ref, out_ref):
        TB, H, PW = x_ref.shape

        x = x_ref[...].astype(jnp.float32)
        y = y_ref[...].astype(jnp.float32)

        # Reflection-pad edge masks, computed once and shared by all pools.
        # Column masks fire at every packed-plane seam, so the lane-roll wrap
        # across seams is corrected exactly like the true image borders.
        row = jax.lax.broadcasted_iota(jnp.int32, (TB, H, PW), 1)
        col = jax.lax.broadcasted_iota(jnp.int32, (TB, H, PW), 2)
        is_row0 = row == 0
        is_rowL = row == H - 1
        is_col0 = col == 0
        is_colL = col == plane_w - 1
        for p in range(1, n_packed):
            is_col0 = jnp.logical_or(is_col0, col == p * plane_w)
            is_colL = jnp.logical_or(is_colL, col == p * plane_w + plane_w - 1)

        def pool3(a):
            # Separable 3x3 SUM (not mean) with ReflectionPad2d(1) semantics.
            up = pltpu.roll(a, shift=1, axis=1)       # up[i] = a[i-1]
            dn = pltpu.roll(a, shift=H - 1, axis=1)   # dn[i] = a[i+1]
            v = a + jnp.where(is_row0, dn, up) + jnp.where(is_rowL, up, dn)
            lf = pltpu.roll(v, shift=1, axis=2)       # lf[j] = v[j-1]
            rt = pltpu.roll(v, shift=PW - 1, axis=2)  # rt[j] = v[j+1]
            return v + jnp.where(is_col0, rt, lf) + jnp.where(is_colL, lf, rt)

        # Only Sx, Sy, Sxy and (Sxx + Syy) enter the SSIM formula, so pool
        # u = x + y and w = x - y instead of x^2, y^2, xy:
        #   Suu + Sww = 2*(Sxx + Syy),   Suu - Sww = 4*Sxy     (exact).
        u = x + y
        w = x - y
        sx = pool3(x)
        sy = pool3(y)
        suu = pool3(u * u)
        sww = pool3(w * w)

        sum_xx_yy_9 = 4.5 * (suu + sww)   # = 9 * (Sxx + Syy)
        sxy_18 = 4.5 * (suu - sww)        # = 18 * Sxy

        p2 = sx * sy
        p2 = p2 + p2                      # 2 * Sx * Sy
        q = sx * sx + sy * sy             # Sx^2 + Sy^2

        n = (p2 + _A1) * (sxy_18 - p2 + _A2)
        d = (q + _A1) * (sum_xx_yy_9 - q + _A2)

        # EUP approximate reciprocal + ONE Newton step (~1e-7 relative error).
        # d >= 81^2 * C1 * C2 > 0, so the reciprocal is safe.
        r = pl.reciprocal(d, approx=True)
        r = r * (2.0 - d * r)

        loss = 0.5 - (0.5 * n) * r        # = (1 - n/d) / 2
        out_ref[...] = jnp.clip(loss, 0.0, 1.0).astype(out_ref.dtype)

    return kernel


# --------------------------------------------------------------------------
# Planning helpers (generation-aware tiling / lane packing).
# --------------------------------------------------------------------------
def _tpu_config():
    """(vmem_capacity_bytes, dual_tensorcore) with conservative fallbacks."""
    vmem_cap = 64 * 1024 * 1024            # safe lower bound (v7x per-TC VMEM)
    try:
        cap = int(pltpu.get_tpu_info().vmem_capacity_bytes)
        if cap > 0:
            vmem_cap = cap
    except Exception:  # noqa: BLE001
        pass
    vmem_cap = max(32 * 1024 * 1024, min(vmem_cap, 128 * 1024 * 1024))
    multi_core = False
    try:
        kind = jax.devices()[0].device_kind.lower()
        multi_core = ("v7" in kind) or ("7x" in kind) or ("v4" in kind)
    except Exception:  # noqa: BLE001
        pass
    return vmem_cap, multi_core


def _pack_factor(w, bc):
    """Number of planes packed side-by-side on the lane axis so the packed
    width is a multiple of 128 (unmasked, lane-dense stores)."""
    if w % 128 == 0:
        return 1
    p = 128 // math.gcd(w, 128)
    if p > 16:
        return 1                            # relayout not worth it
    padded = _cdiv(bc, p) * p
    if (padded - bc) * 4 > bc:              # >25% garbage planes -> skip
        return 1
    return p


def _pack_lanes(a, p):
    bc, h, w = a.shape
    g = _cdiv(bc, p)
    pad = g * p - bc
    if pad:
        a = jnp.concatenate([a, jnp.zeros((pad, h, w), a.dtype)], axis=0)
    return a.reshape(g, p, h, w).transpose(0, 2, 1, 3).reshape(g, h, p * w)


def _unpack_lanes(a, p, bc):
    g, h, pw = a.shape
    w = pw // p
    a = a.reshape(g, h, p, w).transpose(0, 2, 1, 3).reshape(g * p, h, w)
    return a[:bc]


def _per_plane_bytes(h, w_packed, io_itemsize):
    # ~22 live f32 plane-sized temporaries (x/y casts, masks, 4 pool sums,
    # roll/formula temporaries + compiler slack) plus 2x-buffered x, y, out
    # pipeline blocks at the I/O dtype.
    return h * w_packed * (22 * 4 + 6 * io_itemsize)


def _pick_block_planes(n_planes, cap, multi_core):
    """Planes per grid step: prefer few steps and little padding; on dual-TC
    parts keep >= 2 steps and an even step count for balanced sharding."""
    cap = max(1, min(cap, n_planes))
    if multi_core and n_planes >= 2:
        cap = min(cap, _cdiv(n_planes, 2))
    best_tb, best_key = 1, None
    for tb in range(1, cap + 1):
        steps = _cdiv(n_planes, tb)
        waste = steps * tb - n_planes
        odd = (steps % 2) if (multi_core and steps > 1) else 0
        key = (odd, steps, waste)
        if best_key is None or key < best_key:
            best_tb, best_key = tb, key
    return best_tb


# --------------------------------------------------------------------------
# Public wrapper.
# --------------------------------------------------------------------------
def ssim_loss(x, y, *, block_planes=None):
    """SSIM loss map (NCHW); same semantics as monodepth2's SSIM module."""
    assert x.shape == y.shape and x.ndim == 4, "expected matching NCHW inputs"
    n, c, h, w = x.shape
    assert h >= 2 and w >= 2, "ReflectionPad2d(1) needs H, W >= 2"
    bc = n * c

    xs = x.reshape(bc, h, w)
    ys = y.reshape(bc, h, w)

    pack = _pack_factor(w, bc)
    if pack > 1:
        xs = _pack_lanes(xs, pack)
        ys = _pack_lanes(ys, pack)
    n_planes, _, w_packed = xs.shape

    vmem_cap, multi_core = _tpu_config()
    # Leave headroom under physical VMEM (v7x has only 64 MiB per TensorCore).
    vmem_limit = min(vmem_cap * 7 // 8, 112 * 1024 * 1024)
    budget = vmem_limit * 5 // 8
    io_itemsize = jnp.dtype(x.dtype).itemsize
    cap = max(1, budget // _per_plane_bytes(h, w_packed, io_itemsize))
    # TODO(synk): if a single plane ever exceeds the budget (very large images),
    # tile the spatial dims with a 1-row/1-col halo instead of whole planes.
    if block_planes is None:
        block_planes = _pick_block_planes(n_planes, cap, multi_core)
    block_planes = max(1, min(int(block_planes), n_planes))
    # Partial last block is fine: planes are independent (rolls act only on the
    # H/W axes) and out-of-bounds writes are dropped.
    grid = _cdiv(n_planes, block_planes)

    kernel = _make_ssim_kernel(w, pack)
    out = pl.pallas_call(
        kernel,
        out_shape=jax.ShapeDtypeStruct((n_planes, h, w_packed), x.dtype),
        grid_spec=pltpu.PrefetchScalarGridSpec(
            num_scalar_prefetch=0,
            grid=(grid,),
            in_specs=[
                pl.BlockSpec((block_planes, h, w_packed), lambda i: (i, 0, 0)),
                pl.BlockSpec((block_planes, h, w_packed), lambda i: (i, 0, 0)),
            ],
            out_specs=pl.BlockSpec((block_planes, h, w_packed),
                                   lambda i: (i, 0, 0)),
        ),
        compiler_params=pltpu.CompilerParams(
            dimension_semantics=("parallel",),
            vmem_limit_bytes=int(vmem_limit),
        ),
    )(xs, ys)

    if pack > 1:
        out = _unpack_lanes(out, pack, bc)
    return out.reshape(n, c, h, w)


# --------------------------------------------------------------------------
# Pure-JAX reference (mirrors the PyTorch module) and self-test.
# --------------------------------------------------------------------------
def _ssim_loss_ref(x, y):
    xp = jnp.pad(x, ((0, 0), (0, 0), (1, 1), (1, 1)), mode="reflect")
    yp = jnp.pad(y, ((0, 0), (0, 0), (1, 1), (1, 1)), mode="reflect")
    n, c, h, w = x.shape

    def pool3(a):
        s = jnp.zeros((n, c, h, w), jnp.float32)
        for di in range(3):
            for dj in range(3):
                s = s + a[:, :, di:di + h, dj:dj + w]
        return s / 9.0

    mu_x = pool3(xp)
    mu_y = pool3(yp)
    sigma_x = pool3(xp * xp) - mu_x ** 2
    sigma_y = pool3(yp * yp) - mu_y ** 2
    sigma_xy = pool3(xp * yp) - mu_x * mu_y
    num = (2 * mu_x * mu_y + C1) * (2 * sigma_xy + C2)
    den = (mu_x ** 2 + mu_y ** 2 + C1) * (sigma_x + sigma_y + C2)
    return jnp.clip((1 - num / den) / 2, 0.0, 1.0)


if __name__ == "__main__":
    key = jax.random.PRNGKey(0)
    cases = [
        # (shape, forced block_planes)
        ((2, 4, 16, 128), None),   # lane-aligned width, auto tiling
        ((2, 4, 16, 80), None),    # narrow width -> 8 planes packed on lanes
        ((1, 3, 16, 128), 2),      # awkward plane count -> partial last block
    ]
    for idx, (shape, bp) in enumerate(cases):
        kx, ky = jax.random.split(jax.random.fold_in(key, idx))
        x = jax.random.uniform(kx, shape, dtype=jnp.float32)
        y = jax.random.uniform(ky, shape, dtype=jnp.float32)

        out = jax.block_until_ready(ssim_loss(x, y, block_planes=bp))
        ref = _ssim_loss_ref(x, y)

        assert out.shape == shape
        assert bool(jnp.all(jnp.isfinite(out)))
        # f32 cancellation in the sigma terms (present in the reference too)
        # limits agreement to the ~1e-5 level on [0, 1]-valued outputs.
        assert jnp.allclose(out, ref, atol=1e-4, rtol=1e-4), f"mismatch {shape}"
    print("KERNEL_OK")
</pallas_src>

<mosaic_0001>
module attributes {stable_mosaic.version = 11 : i64} {
  func.func @kernel(%arg0: i32, %arg1: memref<8x16x128xf32, #tpu.memory_space<vmem>>, %arg2: memref<8x16x128xf32, #tpu.memory_space<vmem>>, %arg3: memref<8x16x128xf32, #tpu.memory_space<vmem>>) attributes {dimension_semantics = [#tpu.dimension_semantics<parallel>], iteration_bounds = array<i64: 1>, scalar_prefetch = 0 : i64, scratch_operands = 0 : i64, tpu.core_type = #tpu.core_type<tc>, window_params = [{transform_indices = @transform_0, window_bounds = array<i64: 8, 16, 128>}, {transform_indices = @transform_1, window_bounds = array<i64: 8, 16, 128>}, {transform_indices = @transform_2, window_bounds = array<i64: 8, 16, 128>}]} {
    %c0 = arith.constant 0 : index
    %c0_0 = arith.constant 0 : index
    %c0_1 = arith.constant 0 : index
    %0 = vector.load %arg1[%c0, %c0_0, %c0_1] : memref<8x16x128xf32, #tpu.memory_space<vmem>>, vector<8x16x128xf32>
    %c0_2 = arith.constant 0 : index
    %c0_3 = arith.constant 0 : index
    %c0_4 = arith.constant 0 : index
    %1 = vector.load %arg2[%c0_2, %c0_3, %c0_4] : memref<8x16x128xf32, #tpu.memory_space<vmem>>, vector<8x16x128xf32>
    %2 = tpu.iota {dimensions = array<i32: 1>} : vector<8x16x128xi32>
    %3 = tpu.iota {dimensions = array<i32: 2>} : vector<8x16x128xi32>
    %c0_i32 = arith.constant 0 : i32
    %4 = vector.broadcast %c0_i32 : i32 to vector<8x16x128xi32>
    %5 = arith.cmpi eq, %2, %4 : vector<8x16x128xi32>
    %c15_i32 = arith.constant 15 : i32
    %6 = vector.broadcast %c15_i32 : i32 to vector<8x16x128xi32>
    %7 = arith.cmpi eq, %2, %6 : vector<8x16x128xi32>
    %c0_i32_5 = arith.constant 0 : i32
    %8 = vector.broadcast %c0_i32_5 : i32 to vector<8x16x128xi32>
    %9 = arith.cmpi eq, %3, %8 : vector<8x16x128xi32>
    %c127_i32 = arith.constant 127 : i32
    %10 = vector.broadcast %c127_i32 : i32 to vector<8x16x128xi32>
    %11 = arith.cmpi eq, %3, %10 : vector<8x16x128xi32>
    %12 = arith.addf %0, %1 : vector<8x16x128xf32>
    %13 = arith.subf %0, %1 : vector<8x16x128xf32>
    %c1_i32 = arith.constant 1 : i32
    %14 = tpu.dynamic_rotate %0 by %c1_i32 dim 1 : vector<8x16x128xf32>, i32 -> vector<8x16x128xf32>
    %c15_i32_6 = arith.constant 15 : i32
    %15 = tpu.dynamic_rotate %0 by %c15_i32_6 dim 1 : vector<8x16x128xf32>, i32 -> vector<8x16x128xf32>
    %16 = arith.select %5, %15, %14 : vector<8x16x128xi1>, vector<8x16x128xf32>
    %17 = arith.addf %0, %16 : vector<8x16x128xf32>
    %18 = arith.select %7, %14, %15 : vector<8x16x128xi1>, vector<8x16x128xf32>
    %19 = arith.addf %17, %18 : vector<8x16x128xf32>
    %c1_i32_7 = arith.constant 1 : i32
    %20 = tpu.dynamic_rotate %19 by %c1_i32_7 dim 2 : vector<8x16x128xf32>, i32 -> vector<8x16x128xf32>
    %c127_i32_8 = arith.constant 127 : i32
    %21 = tpu.dynamic_rotate %19 by %c127_i32_8 dim 2 : vector<8x16x128xf32>, i32 -> vector<8x16x128xf32>
    %22 = arith.select %9, %21, %20 : vector<8x16x128xi1>, vector<8x16x128xf32>
    %23 = arith.addf %19, %22 : vector<8x16x128xf32>
    %24 = arith.select %11, %20, %21 : vector<8x16x128xi1>, vector<8x16x128xf32>
    %25 = arith.addf %23, %24 : vector<8x16x128xf32>
    %c1_i32_9 = arith.constant 1 : i32
    %26 = tpu.dynamic_rotate %1 by %c1_i32_9 dim 1 : vector<8x16x128xf32>, i32 -> vector<8x16x128xf32>
    %c15_i32_10 = arith.constant 15 : i32
    %27 = tpu.dynamic_rotate %1 by %c15_i32_10 dim 1 : vector<8x16x128xf32>, i32 -> vector<8x16x128xf32>
    %28 = arith.select %5, %27, %26 : vector<8x16x128xi1>, vector<8x16x128xf32>
    %29 = arith.addf %1, %28 : vector<8x16x128xf32>
    %30 = arith.select %7, %26, %27 : vector<8x16x128xi1>, vector<8x16x128xf32>
    %31 = arith.addf %29, %30 : vector<8x16x128xf32>
    %c1_i32_11 = arith.constant 1 : i32
    %32 = tpu.dynamic_rotate %31 by %c1_i32_11 dim 2 : vector<8x16x128xf32>, i32 -> vector<8x16x128xf32>
    %c127_i32_12 = arith.constant 127 : i32
    %33 = tpu.dynamic_rotate %31 by %c127_i32_12 dim 2 : vector<8x16x128xf32>, i32 -> vector<8x16x128xf32>
    %34 = arith.select %9, %33, %32 : vector<8x16x128xi1>, vector<8x16x128xf32>
    %35 = arith.addf %31, %34 : vector<8x16x128xf32>
    %36 = arith.select %11, %32, %33 : vector<8x16x128xi1>, vector<8x16x128xf32>
    %37 = arith.addf %35, %36 : vector<8x16x128xf32>
    %38 = arith.mulf %12, %12 : vector<8x16x128xf32>
    %c1_i32_13 = arith.constant 1 : i32
    %39 = tpu.dynamic_rotate %38 by %c1_i32_13 dim 1 : vector<8x16x128xf32>, i32 -> vector<8x16x128xf32>
    %c15_i32_14 = arith.constant 15 : i32
    %40 = tpu.dynamic_rotate %38 by %c15_i32_14 dim 1 : vector<8x16x128xf32>, i32 -> vector<8x16x128xf32>
    %41 = arith.select %5, %40, %39 : vector<8x16x128xi1>, vector<8x16x128xf32>
    %42 = arith.addf %38, %41 : vector<8x16x128xf32>
    %43 = arith.select %7, %39, %40 : vector<8x16x128xi1>, vector<8x16x128xf32>
    %44 = arith.addf %42, %43 : vector<8x16x128xf32>
    %c1_i32_15 = arith.constant 1 : i32
    %45 = tpu.dynamic_rotate %44 by %c1_i32_15 dim 2 : vector<8x16x128xf32>, i32 -> vector<8x16x128xf32>
    %c127_i32_16 = arith.constant 127 : i32
    %46 = tpu.dynamic_rotate %44 by %c127_i32_16 dim 2 : vector<8x16x128xf32>, i32 -> vector<8x16x128xf32>
    %47 = arith.select %9, %46, %45 : vector<8x16x128xi1>, vector<8x16x128xf32>
    %48 = arith.addf %44, %47 : vector<8x16x128xf32>
    %49 = arith.select %11, %45, %46 : vector<8x16x128xi1>, vector<8x16x128xf32>
    %50 = arith.addf %48, %49 : vector<8x16x128xf32>
    %51 = arith.mulf %13, %13 : vector<8x16x128xf32>
    %c1_i32_17 = arith.constant 1 : i32
    %52 = tpu.dynamic_rotate %51 by %c1_i32_17 dim 1 : vector<8x16x128xf32>, i32 -> vector<8x16x128xf32>
    %c15_i32_18 = arith.constant 15 : i32
    %53 = tpu.dynamic_rotate %51 by %c15_i32_18 dim 1 : vector<8x16x128xf32>, i32 -> vector<8x16x128xf32>
    %54 = arith.select %5, %53, %52 : vector<8x16x128xi1>, vector<8x16x128xf32>
    %55 = arith.addf %51, %54 : vector<8x16x128xf32>
    %56 = arith.select %7, %52, %53 : vector<8x16x128xi1>, vector<8x16x128xf32>
    %57 = arith.addf %55, %56 : vector<8x16x128xf32>
    %c1_i32_19 = arith.constant 1 : i32
    %58 = tpu.dynamic_rotate %57 by %c1_i32_19 dim 2 : vector<8x16x128xf32>, i32 -> vector<8x16x128xf32>
    %c127_i32_20 = arith.constant 127 : i32
    %59 = tpu.dynamic_rotate %57 by %c127_i32_20 dim 2 : vector<8x16x128xf32>, i32 -> vector<8x16x128xf32>
    %60 = arith.select %9, %59, %58 : vector<8x16x128xi1>, vector<8x16x128xf32>
    %61 = arith.addf %57, %60 : vector<8x16x128xf32>
    %62 = arith.select %11, %58, %59 : vector<8x16x128xi1>, vector<8x16x128xf32>
    %63 = arith.addf %61, %62 : vector<8x16x128xf32>
    %64 = arith.addf %50, %63 : vector<8x16x128xf32>
    %cst = arith.constant 4.500000e+00 : f32
    %65 = vector.broadcast %cst : f32 to vector<8x16x128xf32>
    %66 = arith.mulf %65, %64 : vector<8x16x128xf32>
    %67 = arith.subf %50, %63 : vector<8x16x128xf32>
    %cst_21 = arith.constant 4.500000e+00 : f32
    %68 = vector.broadcast %cst_21 : f32 to vector<8x16x128xf32>
    %69 = arith.mulf %68, %67 : vector<8x16x128xf32>
    %70 = arith.mulf %25, %37 : vector<8x16x128xf32>
    %71 = arith.addf %70, %70 : vector<8x16x128xf32>
    %72 = arith.mulf %25, %25 : vector<8x16x128xf32>
    %73 = arith.mulf %37, %37 : vector<8x16x128xf32>
    %74 = arith.addf %72, %73 : vector<8x16x128xf32>
    %cst_22 = arith.constant 8.100000e-03 : f32
    %75 = vector.broadcast %cst_22 : f32 to vector<8x16x128xf32>
    %76 = arith.addf %71, %75 : vector<8x16x128xf32>
    %77 = arith.subf %69, %71 : vector<8x16x128xf32>
    %cst_23 = arith.constant 7.290000e-02 : f32
    %78 = vector.broadcast %cst_23 : f32 to vector<8x16x128xf32>
    %79 = arith.addf %77, %78 : vector<8x16x128xf32>
    %80 = arith.mulf %76, %79 : vector<8x16x128xf32>
    %cst_24 = arith.constant 8.100000e-03 : f32
    %81 = vector.broadcast %cst_24 : f32 to vector<8x16x128xf32>
    %82 = arith.addf %74, %81 : vector<8x16x128xf32>
    %83 = arith.subf %66, %74 : vector<8x16x128xf32>
    %cst_25 = arith.constant 7.290000e-02 : f32
    %84 = vector.broadcast %cst_25 : f32 to vector<8x16x128xf32>
    %85 = arith.addf %83, %84 : vector<8x16x128xf32>
    %86 = arith.mulf %82, %85 : vector<8x16x128xf32>
    %87 = tpu.reciprocal %86 {approx = true} : vector<8x16x128xf32> -> vector<8x16x128xf32>
    %88 = arith.mulf %86, %87 : vector<8x16x128xf32>
    %cst_26 = arith.constant 2.000000e+00 : f32
    %89 = vector.broadcast %cst_26 : f32 to vector<8x16x128xf32>
    %90 = arith.subf %89, %88 : vector<8x16x128xf32>
    %91 = arith.mulf %87, %90 : vector<8x16x128xf32>
    %cst_27 = arith.constant 5.000000e-01 : f32
    %92 = vector.broadcast %cst_27 : f32 to vector<8x16x128xf32>
    %93 = arith.mulf %92, %80 : vector<8x16x128xf32>
    %94 = arith.mulf %93, %91 : vector<8x16x128xf32>
    %cst_28 = arith.constant 5.000000e-01 : f32
    %95 = vector.broadcast %cst_28 : f32 to vector<8x16x128xf32>
    %96 = arith.subf %95, %94 : vector<8x16x128xf32>
    %cst_29 = arith.constant 0.000000e+00 : f32
    %cst_30 = arith.constant 1.000000e+00 : f32
    %97 = vector.broadcast %cst_29 : f32 to vector<8x16x128xf32>
    %98 = arith.maximumf %97, %96 : vector<8x16x128xf32>
    %99 = vector.broadcast %cst_30 : f32 to vector<8x16x128xf32>
    %100 = arith.minimumf %99, %98 : vector<8x16x128xf32>
    %c0_31 = arith.constant 0 : index
    %c0_32 = arith.constant 0 : index
    %c0_33 = arith.constant 0 : index
    %101 = vector.load %arg3[%c0_31, %c0_32, %c0_33] : memref<8x16x128xf32, #tpu.memory_space<vmem>>, vector<8x16x128xf32>
    tpu.vector_store %arg3[%c0_31, %c0_32, %c0_33], %100 {strides = array<i32>} : memref<8x16x128xf32, #tpu.memory_space<vmem>>, vector<8x16x128xf32>,
    return
  }
  func.func @transform_0(%arg0: i32) -> (i32, i32, i32) {
    %c0_i32 = arith.constant 0 : i32
    %c0_i32_0 = arith.constant 0 : i32
    %c0_i32_1 = arith.constant 0 : i32
    return %arg0, %c0_i32, %c0_i32_0 : i32, i32, i32
  }
  func.func @transform_1(%arg0: i32) -> (i32, i32, i32) {
    %c0_i32 = arith.constant 0 : i32
    %c0_i32_0 = arith.constant 0 : i32
    %c0_i32_1 = arith.constant 0 : i32
    return %arg0, %c0_i32, %c0_i32_0 : i32, i32, i32
  }
  func.func @transform_2(%arg0: i32) -> (i32, i32, i32) {
    %c0_i32 = arith.constant 0 : i32
    %c0_i32_0 = arith.constant 0 : i32
    %c0_i32_1 = arith.constant 0 : i32
    return %arg0, %c0_i32, %c0_i32_0 : i32, i32, i32
  }
}

</mosaic_0001>

<bundles_post_ra>
// kernel: tpu_custom_call.1
= control target key start
LH: loop header
LB: loop body
LE: loop exit
PB: predicated region body
PF: predicated region fallthrough
CT: control target
= control target key end

     0   :  { %7 = vsyncpa [#allocation3], 0  ;;  %s3897_s0 = inlined_call_operand.hbm [shape: f32[8,16,128], index: 0, kind: input, shape index: {}]   ;;  %s3898_s1 = inlined_call_operand.hbm [shape: f32[8,16,128], index: 1, kind: input, shape index: {}]   ;;  %s3899_s2 = inlined_call_operand.hbm [shape: f32[8,16,128], index: 2, kind: output, shape index: {}]  }
   0x1   :  { %8 = vsyncpa [#allocation6], 0 }
   0x2   :  { %9 = vsyncpa [#allocation4], 0  ;;  %s14_s11 = sshll.u32 %s3897_s0, 4  ;;  %s1767_s12 = smov [#allocation2]   ;;  %s15_s11 = int_to_ptr.hbm [resolvable:$true] %s14_s11 }
   0x3   :  { %s16_s13 = sshll.u32 %s1767_s12, 4  ;;  %s27_s16 = sshll.u32 %s3898_s1, 4  ;;  %s17_s13 = int_to_ptr.vmem [resolvable:$true] %s16_s13  ;;  %s28_s16 = int_to_ptr.hbm [resolvable:$true] %s27_s16 }
   0x4   :  { %s1768_s17 = smov 128   ;;  %s1769_s18 = smov 8  }
   0x5   :  { %22 = dma.hbm_to_vmem [thread:$0]  %s15_s11, 2048, %s17_s13, [#allocation3], %s1768_s17, %s1768_s17, %s1769_s18  }
   0x6   :  { %s1770_s19 = smov [#allocation5]  }
   0x7   :  { %s29_s20 = sshll.u32 %s1770_s19, 4  ;;  %s30_s20 = int_to_ptr.vmem [resolvable:$true] %s29_s20 }
   0x8   :  { %35 = dma.hbm_to_vmem [thread:$0]  %s28_s16, 2048, %s30_s20, [#allocation6], %s1768_s17, %s1768_s17, %s1769_s18  }
   0x9   :  { %1761 = dma.done.wait [#allocation3], 2048  }
   0xa   :  { %1762 = vsyncadd [#allocation3], 4294965248 }
   0xb   :  { %1763 = dma.done.wait [#allocation6], 2048  }
   0xc   :  { %1764 = vsyncadd [#allocation6], 4294965248  ;;  %v3900_v0 = vlaneseq  ;;  %v1808_v3 = vld [vmem:[#allocation2 + $0x20] sm:$0xff]  ;;  %v1810_v4 = vld [vmem:[#allocation2 + $0x28] sm:$0xff]  ;;  %s1771_s0 = smov 1   ;;  %s1772_s1 = smov 127  }
   0xd   :  { %v1814_v5 = vld [vmem:[#allocation2 + $0x10] sm:$0xff]  ;;  %v121_v6 = vrot.slane %v1808_v3, 7  ;;  %v129_v7 = vrot.slane %v1810_v4, 7  ;;  %v154_v8 = vrot.slane %v1808_v3, 1  ;;  %v162_v9 = vrot.slane %v1810_v4, 1  ;;  %v1821_v10 = vld [vmem:[#allocation2 + $0x18] sm:$0xff] }
   0xe   :  { %v1802_v1 = vshrl.u32 %v3900_v0, 7  ;;  %v1823_v11 = vld [vmem:[#allocation2] sm:$0xff]  ;;  %v120_v12 = vrot.slane %v1814_v5, 7  ;;  %v128_v13 = vrot.slane %v1821_v10, 7  ;;  %v153_v14 = vrot.slane %v1814_v5, 1  ;;  %v1829_v16 = vld [vmem:[#allocation2 + $0x8] sm:$0xff] }
   0xf   :  { %v161_v15 = vrot.slane %v1821_v10, 1  ;;  %v119_v19 = vrot.slane %v1823_v11, 7  ;;  %v127_v20 = vrot.slane %v1829_v16, 7  ;;  %v1844_v25 = vld [vmem:[#allocation2 + $0x30] sm:$0xff]  ;;  %v1846_v26 = vld [vmem:[#allocation2 + $0x38] sm:$0xff]  ;;  %v152_v30 = vrot.slane %v1823_v11, 1 }
  0x10   :  { %v1805_v2 = vadd.s32 8, %v1802_v1  ;;  %vm135_vm0 = vcmp.lt.s32.totalorder %v1802_v1, 1  ;;  %vm168_vm2 = vcmp.lt.s32.totalorder %v1802_v1, 7  ;;  %vm81_vm3 = vcmp.eq.s32.totalorder %v1802_v1, 0  ;;  %v1874_v43 = vld [vmem:[#allocation2 + $0x40] sm:$0xff]  ;;  %v1885_v48 = vld [vmem:[#allocation2 + $0x48] sm:$0xff] }
  0x11   :  { %v138_v17 = vsel %vm135_vm0, %v121_v6, %v129_v7  ;;  %v179_v18 = vsel %vm168_vm2, %v162_v9, %v154_v8  ;;  %v137_v23 = vsel %vm135_vm0, %v120_v12, %v128_v13  ;;  %v178_v24 = vsel %vm168_vm2, %v161_v15, %v153_v14  ;;  %4012 = vst [vmem:[#allocation12_spill] sm:$0xff] %v1874_v43  ;;  %v1906_v60 = vld [vmem:[#allocation2 + $0x50] sm:$0xff]  ;;  %s1773_s21 = smov [#allocation7]   ;;  %s1615_s25 = sshll.u32 %s3899_s2, 4  ;;  %s1616_s25 = int_to_ptr.hbm [resolvable:$true] %s1615_s25 }
  0x12   :  { %vm84_vm1 = vcmp.eq.s32.totalorder %v1805_v2, 15  ;;  %v206_v21 = vadd.f32 %v138_v17, %v1810_v4  ;;  %v204_v27 = vadd.f32 %v137_v23, %v1821_v10  ;;  %v136_v29 = vsel %vm135_vm0, %v119_v19, %v127_v20  ;;  %4013 = vst [vmem:[#allocation13_spill] sm:$0xff] %v1885_v48  ;;  %s1613_s22 = sshll.u32 %s1773_s21, 4  ;;  %s1614_s22 = int_to_ptr.vmem [resolvable:$true] %s1613_s22 }
  0x13   :  { %v222_v22 = vsel %vm84_vm1, %v138_v17, %v179_v18  ;;  %v220_v28 = vsel %vm84_vm1, %v137_v23, %v178_v24  ;;  %v160_v32 = vrot.slane %v1829_v16, 1  ;;  %v202_v33 = vadd.f32 %v136_v29, %v1829_v16  ;;  %4014 = vst [vmem:[#allocation14_spill] sm:$0xff] %v1906_v60 }
  0x14   :  { %v1854_v31 = vadd.f32 %v222_v22, %v206_v21  ;;  %v146_v34 = vsel %vm135_vm0, %v129_v7, %v121_v6  ;;  %v1860_v35 = vadd.f32 %v220_v28, %v204_v27  ;;  %v171_v36 = vsel %vm168_vm2, %v154_v8, %v162_v9  ;;  %v1915_v7 = vld [vmem:[#allocation2 + $0x58] sm:$0xff]  ;;  %v1943_v27 = vld [vmem:[#allocation2 + $0x70] sm:$0xff] }
  0x15   :  { %v122_v37 = vrot.slane %v1844_v25, 7  ;;  %v130_v38 = vrot.slane %v1846_v26, 7  ;;  %v177_v39 = vsel %vm168_vm2, %v160_v32, %v152_v30  ;;  %v189_v40 = vsel %vm81_vm3, %v171_v36, %v146_v34  ;;  %4015 = vst [vmem:[#allocation15_spill] sm:$0xff] %v1915_v7  ;;  %v1945_v28 = vld [vmem:[#allocation2 + $0x78] sm:$0xff] }
  0x16   :  { %4011 = vst [vmem:[#allocation11_spill] sm:$0xff] %v1854_v31  ;;  %259 = vrot.lane.b32.xlu2 %v1854_v31, %s1771_s0  ;;  %v155_v41 = vrot.slane %v1844_v25, 1  ;;  %v163_v42 = vrot.slane %v1846_v26, 1  ;;  %255 = vrot.lane.b32.xlu1 %v1860_v35, %s1771_s0  ;;  %v218_v44 = vsel %vm84_vm1, %v136_v29, %v177_v39  ;;  %v205_v45 = vadd.f32 %v189_v40, %v1808_v3 }
  0x17   :  { %v139_v46 = vsel %vm135_vm0, %v122_v37, %v130_v38  ;;  %v144_v47 = vsel %vm135_vm0, %v127_v20, %v119_v19  ;;  %v1887_v49 = vadd.f32 %v218_v44, %v202_v33  ;;  %v169_v52 = vsel %vm168_vm2, %v152_v30, %v160_v32  ;;  %4016 = vst [vmem:[#allocation16_spill] sm:$0xff] %v1943_v27  ;;  %v1968_v44 = vld [vmem:[#allocation2 + $0x60] sm:$0xff] }
  0x18   :  { %v180_v50 = vsel %vm168_vm2, %v163_v42, %v155_v41  ;;  %v208_v51 = vadd.f32 %v139_v46, %v1846_v26  ;;  %v185_v54 = vsel %vm81_vm3, %v169_v52, %v144_v47  ;;  %v123_v55 = vrot.slane %v1874_v43, 7  ;;  %4017 = vst [vmem:[#allocation17_spill] sm:$0xff] %v1945_v28 }
  0x19   :  { %v224_v53 = vsel %vm84_vm1, %v139_v46, %v180_v50  ;;  %251 = vrot.lane.b32.xlu0 %v1887_v49, %s1771_s0  ;;  %v1901_v56 = vadd.f32 %v205_v45, %v171_v36  ;;  %v201_v57 = vadd.f32 %v185_v54, %v1823_v11  ;;  %v131_v58 = vrot.slane %v1885_v48, 7  ;;  %4020 = vst [vmem:[#allocation20_spill] sm:$0xff] %v1968_v44  ;;  %v1970_v45 = vld [vmem:[#allocation2 + $0x68] sm:$0xff] }
  0x1a   :  { %v156_v59 = vrot.slane %v1874_v43, 1  ;;  %v1908_v61 = vadd.f32 %v224_v53, %v208_v51  ;;  %v164_v62 = vrot.slane %v1885_v48, 1  ;;  %v145_v63 = vsel %vm135_vm0, %v128_v13, %v120_v12  ;;  %4021 = vst [vmem:[#allocation21_spill] sm:$0xff] %v1970_v45 }
  0x1b   :  { %v170_v6 = vsel %vm168_vm2, %v153_v14, %v161_v15  ;;  %v148_v8 = vsel %vm135_vm0, %v131_v58, %v123_v55  ;;  %v147_v17 = vsel %vm135_vm0, %v130_v38, %v122_v37  ;;  %v172_v18 = vsel %vm168_vm2, %v155_v41, %v163_v42 }
  0x1c   :  { %v187_v9 = vsel %vm81_vm3, %v170_v6, %v145_v63  ;;  %v173_v12 = vsel %vm168_vm2, %v156_v59, %v164_v62  ;;  %v124_v13 = vrot.slane %v1906_v60, 7  ;;  %v1930_v14 = vadd.f32 %v201_v57, %v169_v52 }
  0x1d   :  { %v193_v15 = vsel %vm81_vm3, %v173_v12, %v148_v8  ;;  %v132_v19 = vrot.slane %v1915_v7, 7  ;;  %v157_v20 = vrot.slane %v1906_v60, 1  ;;  %v203_v22 = vadd.f32 %v187_v9, %v1814_v5 }
  0x1e   :  { %257 = vrot.lane.b32.xlu2 %v1901_v56, %s1771_s0  ;;  %263 = vrot.lane.b32.xlu1 %v1908_v61, %s1771_s0  ;;  %v209_v21 = vadd.f32 %v193_v15, %v1874_v43  ;;  %v191_v23 = vsel %vm81_vm3, %v172_v18, %v147_v17  ;;  %v165_v24 = vrot.slane %v1915_v7, 1  ;;  %v126_v37 = vrot.slane %v1943_v27, 7 }
  0x1f   :  { %v149_v29 = vsel %vm135_vm0, %v132_v19, %v124_v13  ;;  %v207_v33 = vadd.f32 %v191_v23, %v1844_v25  ;;  %v1956_v34 = vadd.f32 %v203_v22, %v170_v6  ;;  %v141_v36 = vsel %vm135_vm0, %v124_v13, %v132_v19 }
  0x20   :  { %v174_v30 = vsel %vm168_vm2, %v157_v20, %v165_v24  ;;  %v1953_v32 = vadd.f32 %v209_v21, %v173_v12  ;;  %v134_v38 = vrot.slane %v1945_v28, 7  ;;  %v182_v39 = vsel %vm168_vm2, %v165_v24, %v157_v20 }
  0x21   :  { %249 = vrot.lane.b32.xlu0 %v1930_v14, %s1771_s0  ;;  %4019 = vst [vmem:[#allocation19_spill] sm:$0xff] %v1956_v34  ;;  %v195_v40 = vsel %vm81_vm3, %v174_v30, %v149_v29  ;;  %v159_v41 = vrot.slane %v1943_v27, 1  ;;  %v167_v42 = vrot.slane %v1945_v28, 1  ;;  %v1974_v46 = vadd.f32 %v207_v33, %v172_v18 }
  0x22   :  { %4018 = vst [vmem:[#allocation18_spill] sm:$0xff] %v1953_v32  ;;  %v212_v47 = vadd.f32 %v141_v36, %v1915_v7  ;;  %v140_v50 = vsel %vm135_vm0, %v123_v55, %v131_v58  ;;  %v181_v51 = vsel %vm168_vm2, %v164_v62, %v156_v59  ;;  %v228_v52 = vsel %vm84_vm1, %v141_v36, %v182_v39 }
  0x23   :  { %4022 = vst [vmem:[#allocation22_spill] sm:$0xff] %v1974_v46  ;;  %v211_v53 = vadd.f32 %v195_v40, %v1906_v60  ;;  %v151_v54 = vsel %vm135_vm0, %v134_v38, %v126_v37  ;;  %v125_v57 = vrot.slane %v1968_v44, 7  ;;  %v176_v63 = vsel %vm168_vm2, %v159_v41, %v167_v42 }
  0x24   :  { %v133_v55 = vrot.slane %v1970_v45, 7  ;;  %v158_v58 = vrot.slane %v1968_v44, 1  ;;  %v166_v59 = vrot.slane %v1970_v45, 1  ;;  %v1996_v62 = vadd.f32 %v228_v52, %v212_v47 }
  0x25   :  { %v210_v6 = vadd.f32 %v140_v50, %v1885_v48  ;;  %v1999_v8 = vadd.f32 %v211_v53, %v174_v30  ;;  %v226_v9 = vsel %vm84_vm1, %v140_v50, %v181_v51  ;;  %v199_v17 = vsel %vm81_vm3, %v176_v63, %v151_v54 }
  0x26   :  { %265 = vrot.lane.b32.xlu2 %v1953_v32, %s1771_s0  ;;  %253 = vrot.lane.b32.xlu1 %v1956_v34, %s1771_s0  ;;  %4023 = vst [vmem:[#allocation23_spill] sm:$0xff] %v1996_v62  ;;  %v142_v18 = vsel %vm135_vm0, %v125_v57, %v133_v55  ;;  %v150_v12 = vsel %vm135_vm0, %v133_v55, %v125_v57  ;;  %v2083_v57 = vld [vmem:[#allocation5 + $0x10] sm:$0xff] }
  0x27   :  { %v175_v13 = vsel %vm168_vm2, %v158_v58, %v166_v59  ;;  %v183_v15 = vsel %vm168_vm2, %v166_v59, %v158_v58  ;;  %v2015_v19 = vadd.f32 %v226_v9, %v210_v6  ;;  %v215_v20 = vadd.f32 %v199_v17, %v1943_v27 }
  0x28   :  { %v214_v21 = vadd.f32 %v142_v18, %v1970_v45  ;;  %v197_v22 = vsel %vm81_vm3, %v175_v13, %v150_v12  ;;  %v230_v23 = vsel %vm84_vm1, %v142_v18, %v183_v15  ;;  %v143_v36 = vsel %vm135_vm0, %v126_v37, %v134_v38  ;;  %v2065_v37 = vld [vmem:[#allocation5] sm:$0xff]  ;;  %v2067_v38 = vld [vmem:[#allocation5 + $0x8] sm:$0xff]  ;;  %v2106_v15 = vld [vmem:[#allocation5 + $0x38] sm:$0xff] }
  0x29   :  { %261 = vrot.lane.b32.xlu0 %v1974_v46, %s1771_s0  ;;  %4024 = vst [vmem:[#allocation24_spill] sm:$0xff] %v2015_v19  ;;  %v2027_v24 = vadd.f32 %v215_v20, %v176_v63  ;;  %v213_v29 = vadd.f32 %v197_v22, %v1968_v44  ;;  %v184_v39 = vsel %vm168_vm2, %v167_v42, %v159_v41  ;;  %v377_v41 = vrot.slane %v2065_v37, 7  ;;  %v2085_v63 = vld [vmem:[#allocation5 + $0x18] sm:$0xff]  ;;  %v2257_v44 = vld [vmem:[#allocation5 + $0x70] sm:$0xff] }
  0x2a   :  { %v2030_v30 = vadd.f32 %v230_v23, %v214_v21  ;;  %v216_v40 = vadd.f32 %v143_v36, %v1945_v28  ;;  %v232_v47 = vsel %vm84_vm1, %v143_v36, %v184_v39  ;;  %v385_v42 = vrot.slane %v2067_v38, 7  ;;  %v2120_v36 = vld [vmem:[#allocation5 + $0x28] sm:$0xff]  ;;  %v2216_v28 = vld [vmem:[#allocation5 + $0x58] sm:$0xff] }
  0x2b   :  { %4025 = vst [vmem:[#allocation25_spill] sm:$0xff] %v2027_v24  ;;  %v2034_v33 = vadd.f32 %v213_v29, %v175_v13  ;;  %v409_v51 = vrot.slane %v2065_v37, 1  ;;  %v417_v52 = vrot.slane %v2067_v38, 1  ;;  %v378_v58 = vrot.slane %v2083_v57, 7  ;;  %v2104_v13 = vld [vmem:[#allocation5 + $0x30] sm:$0xff]  ;;  %v2118_v29 = vld [vmem:[#allocation5 + $0x20] sm:$0xff] }
  0x2c   :  { %v2049_v50 = vadd.f32 %v232_v47, %v216_v40  ;;  %v401_v53 = vsel %vm135_vm0, %v385_v42, %v377_v41  ;;  %v386_v59 = vrot.slane %v2085_v63, 7  ;;  %v410_v6 = vrot.slane %v2083_v57, 1  ;;  %4037 = vst [vmem:[#allocation37_spill] sm:$0xff] %v2216_v28 }
  0x2d   :  { %4026 = vst [vmem:[#allocation26_spill] sm:$0xff] %v2034_v33  ;;  %v425_v54 = vsel %vm168_vm2, %v409_v51, %v417_v52  ;;  %v418_v9 = vrot.slane %v2085_v63, 1  ;;  %v3901_v39 = vrot.slane %v2104_v13, 7  ;;  %v388_v40 = vrot.slane %v2106_v15, 7 }
  0x2e   :  { %271 = vrot.lane.b32.xlu2 %v1996_v62, %s1771_s0  ;;  %269 = vrot.lane.b32.xlu1 %v1999_v8, %s1771_s0  ;;  %4027 = vst [vmem:[#allocation27_spill] sm:$0xff] %v2049_v50  ;;  %v441_v55 = vsel %vm81_vm3, %v425_v54, %v401_v53  ;;  %v402_v18 = vsel %vm135_vm0, %v386_v59, %v378_v58  ;;  %v3904_v47 = vrot.slane %v2104_v13, 1  ;;  %v3903_v53 = vrot.slane %v2106_v15, 1 }
  0x2f   :  { %v457_v17 = vadd.f32 %v441_v55, %v2065_v37  ;;  %v426_v12 = vsel %vm168_vm2, %v410_v6, %v418_v9  ;;  %v394_v22 = vsel %vm135_vm0, %v378_v58, %v386_v59  ;;  %v434_v23 = vsel %vm168_vm2, %v418_v9, %v410_v6 }
  0x30   :  { %v443_v21 = vsel %vm81_vm3, %v426_v12, %v402_v18  ;;  %v460_v58 = vadd.f32 %v394_v22, %v2085_v63  ;;  %v476_v59 = vsel %vm84_vm1, %v394_v22, %v434_v23  ;;  %v433_v6 = vsel %vm168_vm2, %v417_v52, %v409_v51  ;;  %v2152_v52 = vld [vmem:[#allocation5 + $0x40] sm:$0xff] }
  0x31   :  { %267 = vrot.lane.b32.xlu0 %v2015_v19, %s1771_s0  ;;  %v2110_v20 = vadd.f32 %v457_v17, %v425_v54  ;;  %v393_v54 = vsel %vm135_vm0, %v377_v41, %v385_v42  ;;  %v459_v55 = vadd.f32 %v443_v21, %v2083_v57  ;;  %v379_v9 = vrot.slane %v2118_v29, 7  ;;  %4029 = vst [vmem:[#allocation29_spill] sm:$0xff] %v2152_v52  ;;  %v2154_v21 = vld [vmem:[#allocation5 + $0x48] sm:$0xff] }
  0x32   :  { %v387_v41 = vrot.slane %v2120_v36, 7  ;;  %v411_v42 = vrot.slane %v2118_v29, 1  ;;  %v419_v17 = vrot.slane %v2120_v36, 1  ;;  %v404_v18 = vsel %vm135_vm0, %v388_v40, %v3901_v39  ;;  %4030 = vst [vmem:[#allocation30_spill] sm:$0xff] %v2154_v21 }
  0x33   :  { %4028 = vst [vmem:[#allocation28_spill] sm:$0xff] %v2110_v20  ;;  %v428_v51 = vsel %vm168_vm2, %v3904_v47, %v3903_v53  ;;  %v2158_v22 = vadd.f32 %v459_v55, %v426_v12  ;;  %v2160_v23 = vadd.f32 %v476_v59, %v460_v58  ;;  %v458_v0 = vadd.f32 %v393_v54, %v2067_v38 }
  0x34   :  { %v474_v39 = vsel %vm84_vm1, %v393_v54, %v433_v6  ;;  %v447_v53 = vsel %vm81_vm3, %v428_v51, %v404_v18  ;;  %v403_v47 = vsel %vm135_vm0, %v387_v41, %v379_v9  ;;  %v427_v12 = vsel %vm168_vm2, %v411_v42, %v419_v17 }
  0x35   :  { %4031 = vst [vmem:[#allocation31_spill] sm:$0xff] %v2160_v23  ;;  %v381_v55 = vrot.slane %v2152_v52, 7  ;;  %v389_v58 = vrot.slane %v2154_v21, 7  ;;  %v413_v59 = vrot.slane %v2152_v52, 1  ;;  %v421_v54 = vrot.slane %v2154_v21, 1 }
  0x36   :  { %277 = vrot.lane.b32.xlu2 %v2027_v24, %s1771_s0  ;;  %275 = vrot.lane.b32.xlu1 %v2030_v30, %s1771_s0  ;;  %v435_v6 = vsel %vm168_vm2, %v419_v17, %v411_v42  ;;  %v2181_v18 = vadd.f32 %v474_v39, %v458_v0  ;;  %v2197_v39 = vld [vmem:[#allocation5 + $0x60] sm:$0xff]  ;;  %v4040_v27 = vrot.slane %v2104_v13, 1 }
  0x37   :  { %v405_v17 = vsel %vm135_vm0, %v389_v58, %v381_v55  ;;  %v429_v0 = vsel %vm168_vm2, %v413_v59, %v421_v54  ;;  %4034 = vst [vmem:[#allocation34_spill] sm:$0xff] %v2197_v39 }
  0x38   :  { %4032 = vst [vmem:[#allocation32_spill] sm:$0xff] %v2181_v18 }
  0x39   :  { %273 = vrot.lane.b32.xlu0 %v2034_v33, %s1771_s0 }
  0x3e   :  { %283 = vrot.lane.b32.xlu2 %v1887_v49, %s1772_s1  ;;  %281 = vrot.lane.b32.xlu1 %v1930_v14, %s1772_s1 }
  0x41   :  { %279 = vrot.lane.b32.xlu0 %v2049_v50, %s1771_s0 }
  0x46   :  { %289 = vrot.lane.b32.xlu2 %v1901_v56, %s1772_s1  ;;  %287 = vrot.lane.b32.xlu1 %v1860_v35, %s1772_s1 }
  0x49   :  { %285 = vrot.lane.b32.xlu0 %v1956_v34, %s1772_s1 }
  0x4e   :  { %295 = vrot.lane.b32.xlu2 %v1908_v61, %s1772_s1  ;;  %293 = vrot.lane.b32.xlu1 %v1974_v46, %s1772_s1  ;;  %v2259_v46 = vld [vmem:[#allocation5 + $0x78] sm:$0xff] }
  0x51   :  { %291 = vrot.lane.b32.xlu0 %v1854_v31, %s1772_s1 }
  0x56   :  { %301 = vrot.lane.b32.xlu2 %v1999_v8, %s1772_s1  ;;  %299 = vrot.lane.b32.xlu1 %v2015_v19, %s1772_s1  ;;  %v390_v19 = vrot.slane %v2216_v28, 7 }
  0x59   :  { %297 = vrot.lane.b32.xlu0 %v1953_v32, %s1772_s1 }
  0x5e   :  { %307 = vrot.lane.b32.xlu2 %v2030_v30, %s1772_s1  ;;  %305 = vrot.lane.b32.xlu1 %v2034_v33, %s1772_s1  ;;  %v2214_v33 = vld [vmem:[#allocation5 + $0x50] sm:$0xff] }
  0x5f   :  { %4036 = vst [vmem:[#allocation36_spill] sm:$0xff] %v2214_v33 }
  0x61   :  { %303 = vrot.lane.b32.xlu0 %v1996_v62, %s1772_s1  ;;  %v395_v62 = vsel %vm135_vm0, %v379_v9, %v387_v41  ;;  %v463_v9 = vadd.f32 %v447_v53, %v2104_v13  ;;  %v2199_v53 = vld [vmem:[#allocation5 + $0x68] sm:$0xff] }
  0x62   :  { %v462_v41 = vadd.f32 %v395_v62, %v2120_v36  ;;  %v478_v42 = vsel %vm84_vm1, %v395_v62, %v435_v6  ;;  %v449_v62 = vsel %vm81_vm3, %v429_v0, %v405_v17  ;;  %v397_v6 = vsel %vm135_vm0, %v381_v55, %v389_v58 }
  0x63   :  { %v2203_v31 = vadd.f32 %v463_v9, %v428_v51  ;;  %v383_v51 = vrot.slane %v2197_v39, 7  ;;  %v391_v9 = vrot.slane %v2199_v53, 7  ;;  %v465_v55 = vadd.f32 %v449_v62, %v2152_v52 }
  0x64   :  { %v466_v58 = vadd.f32 %v397_v6, %v2154_v21  ;;  %v382_v62 = vrot.slane %v2214_v33, 7 }
  0x65   :  { %4035 = vst [vmem:[#allocation35_spill] sm:$0xff] %v2203_v31  ;;  %v2261_v21 = vadd.f32 %v465_v55, %v429_v0  ;;  %v384_v0 = vrot.slane %v2257_v44, 7  ;;  %v392_v55 = vrot.slane %v2259_v46, 7 }
  0x66   :  { %505 = vrot.lane.b32.xlu2 %v2110_v20, %s1771_s0  ;;  %311 = vrot.lane.b32.xlu1 %v2049_v50, %s1772_s1  ;;  %v437_v50 = vsel %vm168_vm2, %v421_v54, %v413_v59  ;;  %v4039_v59 = vrot.slane %v2104_v13, 7  ;;  %v398_v43 = vsel %vm135_vm0, %v382_v62, %v390_v19 }
  0x67   :  { %v482_v17 = vsel %vm84_vm1, %v397_v6, %v437_v50  ;;  %v407_v50 = vsel %vm135_vm0, %v391_v9, %v383_v51  ;;  %v408_v60 = vsel %vm135_vm0, %v392_v55, %v384_v0 }
  0x68   :  { %v396_v54 = vsel %vm135_vm0, %v4039_v59, %v388_v40  ;;  %v414_v40 = vrot.slane %v2214_v33, 1  ;;  %v422_v59 = vrot.slane %v2216_v28, 1 }
  0x69   :  { %309 = vrot.lane.b32.xlu0 %v2027_v24, %s1772_s1  ;;  %v445_v24 = vsel %vm81_vm3, %v427_v12, %v403_v47 }
  0x6a   :  { %v461_v47 = vadd.f32 %v445_v24, %v2118_v29  ;;  %v415_v24 = vrot.slane %v2197_v39, 1  ;;  %v430_v34 = vsel %vm168_vm2, %v414_v40, %v422_v59 }
  0x6e   :  { %511 = vrot.lane.b32.xlu2 %v2160_v23, %s1771_s0  ;;  %509 = vrot.lane.b32.xlu1 %v2158_v22, %s1771_s0 }
  0x70   :  { %v2189_v32 = vpop.permute.xlu2 %259 }
  0x71   :  { %4033 = vst [vmem:[#allocation33_spill] sm:$0xff] %v2189_v32  ;;  %507 = vrot.lane.b32.xlu0 %v2181_v18, %s1771_s0  ;;  %v2206_v32 = vadd.f32 %v478_v42, %v462_v41  ;;  %v423_v41 = vrot.slane %v2199_v53, 1  ;;  %v2224_v42 = vadd.f32 %v461_v47, %v427_v12  ;;  %v4041_v12 = vrot.slane %v2106_v15, 1 }
  0x73   :  { %4038 = vst [vmem:[#allocation38_spill] sm:$0xff] %v2224_v42  ;;  %v436_v47 = vsel %vm168_vm2, %v4041_v12, %v4040_v27  ;;  %v431_v6 = vsel %vm168_vm2, %v415_v24, %v423_v41  ;;  %v2254_v27 = vadd.f32 %v482_v17, %v466_v58  ;;  %v464_v12 = vadd.f32 %v396_v54, %v2106_v15 }
  0x74   :  { %v480_v48 = vsel %vm84_vm1, %v396_v54, %v436_v47  ;;  %v453_v52 = vsel %vm81_vm3, %v431_v6, %v407_v50  ;;  %v438_v58 = vsel %vm168_vm2, %v422_v59, %v414_v40  ;;  %v406_v17 = vsel %vm135_vm0, %v390_v19, %v382_v62 }
  0x75   :  { %4042 = vst [vmem:[#allocation39_spill] sm:$0xff] %v2254_v27  ;;  %v416_v54 = vrot.slane %v2257_v44, 1  ;;  %v424_v47 = vrot.slane %v2259_v46, 1  ;;  %v2281_v50 = vadd.f32 %v480_v48, %v464_v12  ;;  %v469_v7 = vadd.f32 %v453_v52, %v2197_v39 }
  0x76   :  { %517 = vrot.lane.b32.xlu2 %v2203_v31, %s1771_s0  ;;  %515 = vrot.lane.b32.xlu1 %v2206_v32, %s1771_s0  ;;  %v468_v19 = vadd.f32 %v398_v43, %v2216_v28  ;;  %v451_v62 = vsel %vm81_vm3, %v430_v34, %v406_v17  ;;  %v484_v59 = vsel %vm84_vm1, %v398_v43, %v438_v58 }
  0x77   :  { %4043 = vst [vmem:[#allocation40_spill] sm:$0xff] %v2281_v50  ;;  %v432_v48 = vsel %vm168_vm2, %v416_v54, %v424_v47  ;;  %v2299_v52 = vadd.f32 %v469_v7, %v431_v6  ;;  %v467_v12 = vadd.f32 %v451_v62, %v2214_v33  ;;  %v400_v17 = vsel %vm135_vm0, %v384_v0, %v392_v55 }
  0x78   :  { %v2244_v45 = vpop.permute.xlu2 %257  ;;  %v2302_v39 = vadd.f32 %v484_v59, %v468_v19  ;;  %v455_v43 = vsel %vm81_vm3, %v432_v48, %v408_v60  ;;  %v440_v58 = vsel %vm168_vm2, %v424_v47, %v416_v54  ;;  %v472_v7 = vadd.f32 %v400_v17, %v2259_v46 }
  0x79   :  { %513 = vrot.lane.b32.xlu0 %v2224_v42, %s1771_s0  ;;  %4045 = vst [vmem:[#allocation42_spill] sm:$0xff] %v2299_v52  ;;  %v471_v6 = vadd.f32 %v455_v43, %v2257_v44  ;;  %v488_v0 = vsel %vm84_vm1, %v400_v17, %v440_v58  ;;  %v399_v60 = vsel %vm135_vm0, %v383_v51, %v391_v9 }
  0x7a   :  { %4046 = vst [vmem:[#allocation43_spill] sm:$0xff] %v2302_v39  ;;  %v439_v54 = vsel %vm168_vm2, %v423_v41, %v415_v24  ;;  %v2330_v47 = vadd.f32 %v488_v0, %v472_v7  ;;  %v470_v19 = vadd.f32 %v399_v60, %v2199_v53 }
  0x7b   :  { %v2333_v62 = vadd.f32 %v471_v6, %v432_v48  ;;  %v486_v59 = vsel %vm84_vm1, %v399_v60, %v439_v54 }
  0x7c   :  { %4048 = vst [vmem:[#allocation45_spill] sm:$0xff] %v2330_v47  ;;  %v2339_v9 = vadd.f32 %v486_v59, %v470_v19  ;;  %v87_v19 = vadd.f32 %v2065_v37, %v1823_v11  ;;  %v88_v59 = vadd.f32 %v2067_v38, %v1829_v16 }
  0x7d   :  { %4049 = vst [vmem:[#allocation46_spill] sm:$0xff] %v2333_v62 }
  0x7e   :  { %523 = vrot.lane.b32.xlu2 %v2254_v27, %s1771_s0  ;;  %521 = vrot.lane.b32.xlu1 %v2261_v21, %s1771_s0  ;;  %4050 = vst [vmem:[#allocation47_spill] sm:$0xff] %v2339_v9  ;;  %v634_v16 = vmul.f32 %v88_v59, %v88_v59 }
  0x80   :  { %v2289_v40 = vpop.permute.xlu2 %265 }
  0x81   :  { %4044 = vst [vmem:[#allocation41_spill] sm:$0xff] %v2289_v40  ;;  %519 = vrot.lane.b32.xlu0 %v2281_v50, %s1771_s0  ;;  %v2312_v40 = vadd.f32 %v467_v12, %v430_v34  ;;  %v4051_v12 = vlaneseq }
  0x83   :  { %4047 = vst [vmem:[#allocation44_spill] sm:$0xff] %v2312_v40  ;;  %v2346_v17 = vand.u32 127, %v4051_v12 }
  0x85   :  { %vm85_vm4 = vcmp.eq.s32.totalorder %v2346_v17, 0  ;;  %vm86_vm5 = vcmp.eq.s32.totalorder %v2346_v17, 127 }
  0x86   :  { %529 = vrot.lane.b32.xlu2 %v2299_v52, %s1771_s0  ;;  %527 = vrot.lane.b32.xlu1 %v2302_v39, %s1771_s0 }
  0x88   :  { %v2322_v55 = vpop.permute.xlu2 %271  ;;  %v2326_v34 = vpop.permute.xlu1 %255 }
  0x89   :  { %525 = vrot.lane.b32.xlu0 %v2312_v40, %s1771_s0 }
  0x8b   :  { %v252_v51 = vpop.permute.xlu0 %251 }
  0x8e   :  { %535 = vrot.lane.b32.xlu2 %v2330_v47, %s1771_s0  ;;  %533 = vrot.lane.b32.xlu1 %v2333_v62, %s1771_s0 }
  0x90   :  { %v2343_v24 = vpop.permute.xlu2 %277  ;;  %v264_v41 = vpop.permute.xlu1 %263 }
  0x91   :  { %531 = vrot.lane.b32.xlu0 %v2339_v9, %s1771_s0 }
  0x93   :  { %v2350_v48 = vpop.permute.xlu0 %249 }
  0x96   :  { %541 = vrot.lane.b32.xlu2 %v2158_v22, %s1772_s1  ;;  %539 = vrot.lane.b32.xlu1 %v2181_v18, %s1772_s1 }
  0x98   :  { %v284_v43 = vpop.permute.xlu2 %283  ;;  %v2358_v58 = vpop.permute.xlu1 %253 }
  0x99   :  { %v314_v7 = vsel %vm85_vm4, %v284_v43, %v252_v51  ;;  %v346_v6 = vsel %vm86_vm5, %v252_v51, %v284_v43  ;;  %537 = vrot.lane.b32.xlu0 %v2110_v20, %s1772_s1  ;;  %v657_v20 = vrot.slane %v634_v16, 7 }
  0x9a   :  { %v330_v0 = vadd.f32 %v314_v7, %v1887_v49  ;;  %v633_v7 = vmul.f32 %v87_v19, %v87_v19  ;;  %v92_v19 = vadd.f32 %v2120_v36, %v1810_v4 }
  0x9b   :  { %v2369_v54 = vpop.permute.xlu0 %261 }
  0x9c   :  { %v2367_v60 = vadd.f32 %v346_v6, %v330_v0  ;;  %v681_v18 = vrot.slane %v633_v7, 1 }
  0x9e   :  { %4052 = vst [vmem:[#allocation48_spill] sm:$0xff] %v2367_v60  ;;  %547 = vrot.lane.b32.xlu2 %v2206_v32, %s1772_s1  ;;  %545 = vrot.lane.b32.xlu1 %v2224_v42, %s1772_s1  ;;  %v649_v42 = vrot.slane %v633_v7, 7  ;;  %v689_v60 = vrot.slane %v634_v16, 1 }
  0xa0   :  { %v290_v51 = vpop.permute.xlu2 %289  ;;  %v270_v12 = vpop.permute.xlu1 %269  ;;  %v665_v4 = vsel %vm135_vm0, %v649_v42, %v657_v20 }
  0xa1   :  { %v317_v49 = vsel %vm85_vm4, %v290_v51, %v2244_v45  ;;  %v349_v43 = vsel %vm86_vm5, %v2244_v45, %v290_v51  ;;  %543 = vrot.lane.b32.xlu0 %v2160_v23, %s1772_s1 }
  0xa2   :  { %v333_v11 = vadd.f32 %v317_v49, %v1901_v56  ;;  %v91_v56 = vadd.f32 %v2118_v29, %v1808_v3  ;;  %v697_v3 = vsel %vm168_vm2, %v681_v18, %v689_v60 }
  0xa3   :  { %v2390_v0 = vpop.permute.xlu0 %267 }
  0xa4   :  { %v2388_v6 = vadd.f32 %v349_v43, %v333_v11  ;;  %v673_v11 = vsel %vm135_vm0, %v657_v20, %v649_v42  ;;  %v730_v20 = vadd.f32 %v665_v4, %v634_v16 }
  0xa6   :  { %553 = vrot.lane.b32.xlu2 %v2261_v21, %s1772_s1  ;;  %551 = vrot.lane.b32.xlu1 %v2281_v50, %s1772_s1  ;;  %v89_v50 = vadd.f32 %v2083_v57, %v1814_v5  ;;  %v705_v5 = vsel %vm168_vm2, %v689_v60, %v681_v18  ;;  %v93_v18 = vadd.f32 %v2104_v13, %v1844_v25 }
  0xa7   :  { %v746_v25 = vsel %vm84_vm1, %v665_v4, %v705_v5 }
  0xa8   :  { %v296_v45 = vpop.permute.xlu2 %295  ;;  %v276_v59 = vpop.permute.xlu1 %275  ;;  %v2433_v42 = vmul.f32 %v89_v50, %v89_v50 }
  0xa9   :  { %v320_v51 = vsel %vm85_vm4, %v296_v45, %v264_v41  ;;  %v352_v49 = vsel %vm86_vm5, %v264_v41, %v296_v45  ;;  %549 = vrot.lane.b32.xlu0 %v2203_v31, %s1772_s1  ;;  %v90_v45 = vadd.f32 %v2085_v63, %v1821_v10  ;;  %v713_v31 = vsel %vm81_vm3, %v697_v3, %v673_v11 }
  0xaa   :  { %v336_v43 = vadd.f32 %v320_v51, %v1908_v61  ;;  %v2421_v61 = vmul.f32 %v91_v56, %v91_v56  ;;  %v2423_v51 = vmul.f32 %v92_v19, %v92_v19  ;;  %v729_v56 = vadd.f32 %v713_v31, %v633_v7 }
  0xab   :  { %v2417_v41 = vpop.permute.xlu0 %273  ;;  %v650_v16 = vrot.slane %v2433_v42, 7 }
  0xac   :  { %v2415_v23 = vadd.f32 %v352_v49, %v336_v43  ;;  %v636_v49 = vmul.f32 %v90_v45, %v90_v45  ;;  %v3938_v19 = vrot.slane %v2421_v61, 7  ;;  %v94_v45 = vadd.f32 %v2106_v15, %v1846_v26 }
  0xad   :  { %v2485_v5 = vadd.f32 %v729_v56, %v697_v3 }
  0xae   :  { %4053 = vst [vmem:[#allocation49_spill] sm:$0xff] %v2415_v23  ;;  %559 = vrot.lane.b32.xlu2 %v2302_v39, %s1772_s1  ;;  %557 = vrot.lane.b32.xlu1 %v2312_v40, %s1772_s1  ;;  %v658_v43 = vrot.slane %v636_v49, 7 }
  0xaf   :  { %4057 = vst [vmem:[#allocation51_spill] sm:$0xff] %v2485_v5 }
  0xb0   :  { %v302_v10 = vpop.permute.xlu2 %301  ;;  %v282_v11 = vpop.permute.xlu1 %281 }
  0xb1   :  { %v323_v23 = vsel %vm85_vm4, %v302_v10, %v270_v12  ;;  %v355_v40 = vsel %vm86_vm5, %v270_v12, %v302_v10  ;;  %555 = vrot.lane.b32.xlu0 %v2254_v27, %s1772_s1  ;;  %v313_v31 = vsel %vm85_vm4, %v282_v11, %v2350_v48  ;;  %v345_v50 = vsel %vm86_vm5, %v2350_v48, %v282_v11 }
  0xb2   :  { %v339_v60 = vadd.f32 %v323_v23, %v1999_v8  ;;  %v3937_v12 = vrot.slane %v2423_v51, 1  ;;  %v329_v7 = vadd.f32 %v313_v31, %v1930_v14  ;;  %v682_v48 = vrot.slane %v2433_v42, 1 }
  0xb3   :  { %v2462_v39 = vpop.permute.xlu0 %279  ;;  %v690_v8 = vrot.slane %v636_v49, 1  ;;  %v2467_v11 = vmul.f32 %v93_v18, %v93_v18  ;;  %v4055_v14 = vrot.slane %v2423_v51, 7  ;;  %v2487_v18 = vadd.f32 %v746_v25, %v730_v20 }
  0xb4   :  { %v2460_v10 = vadd.f32 %v355_v40, %v339_v60  ;;  %v2465_v23 = vadd.f32 %v345_v50, %v329_v7  ;;  %v4056_v40 = vrot.slane %v2421_v61, 1  ;;  %v2489_v31 = vmul.f32 %v94_v45, %v94_v45 }
  0xb5   :  { %v675_v26 = vsel %vm135_vm0, %v4055_v14, %v3938_v19  ;;  %4058 = vst [vmem:[#allocation52_spill] sm:$0xff] %v2487_v18  ;;  %v674_v60 = vsel %vm135_vm0, %v658_v43, %v650_v16  ;;  %v698_v7 = vsel %vm168_vm2, %v682_v48, %v690_v8  ;;  %v666_v14 = vsel %vm135_vm0, %v650_v16, %v658_v43 }
  0xb6   :  { %4054 = vst [vmem:[#allocation50_spill] sm:$0xff] %v2460_v10  ;;  %565 = vrot.lane.b32.xlu2 %v2333_v62, %s1772_s1  ;;  %v699_v4 = vsel %vm168_vm2, %v4056_v40, %v3937_v12  ;;  %563 = vrot.lane.b32.xlu1 %v2339_v9, %s1772_s1  ;;  %v706_v40 = vsel %vm168_vm2, %v690_v8, %v682_v48  ;;  %v652_v25 = vrot.slane %v2467_v11, 7  ;;  %v660_v8 = vrot.slane %v2489_v31, 7  ;;  %v4061_v10 = vld [vmem:[#allocation15_spill] sm:$0xff] }
  0xb7   :  { %v717_v56 = vsel %vm81_vm3, %v699_v4, %v675_v26  ;;  %v692_v26 = vrot.slane %v2489_v31, 1  ;;  %v732_v27 = vadd.f32 %v666_v14, %v636_v49  ;;  %v715_v49 = vsel %vm81_vm3, %v698_v7, %v674_v60 }
  0xb8   :  { %v308_v50 = vpop.permute.xlu2 %307  ;;  %v288_v12 = vpop.permute.xlu1 %287 }
  0xb9   :  { %v326_v3 = vsel %vm85_vm4, %v308_v50, %v276_v59  ;;  %v358_v20 = vsel %vm86_vm5, %v276_v59, %v308_v50  ;;  %561 = vrot.lane.b32.xlu0 %v2299_v52, %s1772_s1  ;;  %v316_v43 = vsel %vm85_vm4, %v288_v12, %v2326_v34  ;;  %v348_v16 = vsel %vm86_vm5, %v2326_v34, %v288_v12  ;;  %v4059_v50 = vld [vmem:[#allocation14_spill] sm:$0xff] }
  0xba   :  { %v342_v45 = vadd.f32 %v326_v3, %v2030_v30  ;;  %v684_v59 = vrot.slane %v2467_v11, 1  ;;  %v332_v48 = vadd.f32 %v316_v43, %v1860_v35  ;;  %v97_v19 = vadd.f32 %v2214_v33, %v4059_v50  ;;  %v4062_v43 = vld [vmem:[#allocation19_spill] sm:$0xff]  ;;  %v4066_v50 = vld [vmem:[#allocation30_spill] sm:$0xff] }
  0xbb   :  { %v286_v9 = vpop.permute.xlu0 %285  ;;  %v98_v34 = vadd.f32 %v2216_v28, %v4061_v10  ;;  %v733_v3 = vadd.f32 %v717_v56, %v2421_v61  ;;  %v748_v10 = vsel %vm84_vm1, %v666_v14, %v706_v40  ;;  %v4065_v56 = vld [vmem:[#allocation13_spill] sm:$0xff]  ;;  %v668_v33 = vsel %vm135_vm0, %v652_v25, %v660_v8 }
  0xbc   :  { %v2521_v52 = vadd.f32 %v358_v20, %v342_v45  ;;  %v2525_v12 = vadd.f32 %v348_v16, %v332_v48  ;;  %v315_v35 = vsel %vm85_vm4, %v286_v9, %v2358_v58  ;;  %v347_v30 = vsel %vm86_vm5, %v2358_v58, %v286_v9  ;;  %v4063_v16 = vld [vmem:[#allocation12_spill] sm:$0xff]  ;;  %v4064_v45 = vld [vmem:[#allocation29_spill] sm:$0xff] }
  0xbd   :  { %v331_v20 = vadd.f32 %v315_v35, %v4062_v43  ;;  %v95_v48 = vadd.f32 %v4064_v45, %v4063_v16  ;;  %v676_v9 = vsel %vm135_vm0, %v660_v8, %v652_v25  ;;  %v700_v58 = vsel %vm168_vm2, %v684_v59, %v692_v26 }
  0xbe   :  { %4060 = vst [vmem:[#allocation14_spill] sm:$0xff] %v2521_v52  ;;  %779 = vrot.lane.b32.xlu2 %v2487_v18, %s1771_s0  ;;  %777 = vrot.lane.b32.xlu1 %v2485_v5, %s1771_s0  ;;  %v96_v35 = vadd.f32 %v4066_v50, %v4065_v56  ;;  %v2551_v43 = vmul.f32 %v97_v19, %v97_v19  ;;  %v4070_v56 = vld [vmem:[#allocation20_spill] sm:$0xff] }
  0xbf   :  { %v2553_v60 = vadd.f32 %v347_v30, %v331_v20  ;;  %v2557_v40 = vmul.f32 %v98_v34, %v98_v34  ;;  %v731_v52 = vadd.f32 %v715_v49, %v2433_v42  ;;  %v2560_v62 = vadd.f32 %v748_v10, %v732_v27 }
  0xc0   :  { %v2555_v14 = vpop.permute.xlu2 %505  ;;  %v294_v16 = vpop.permute.xlu1 %293  ;;  %v2562_v28 = vadd.f32 %v733_v3, %v699_v4  ;;  %v719_v27 = vsel %vm81_vm3, %v700_v58, %v676_v9  ;;  %v708_v42 = vsel %vm168_vm2, %v692_v26, %v684_v59  ;;  %v4069_v4 = vld [vmem:[#allocation22_spill] sm:$0xff]  ;;  %v2579_v25 = vmul.f32 %v95_v48, %v95_v48  ;;  %v4074_v26 = vld [vmem:[#allocation21_spill] sm:$0xff] }
  0xc1   :  { %4067 = vst [vmem:[#allocation15_spill] sm:$0xff] %v2560_v62  ;;  %567 = vrot.lane.b32.xlu0 %v2330_v47, %s1772_s1  ;;  %v319_v19 = vsel %vm85_vm4, %v294_v16, %v2369_v54  ;;  %v351_v34 = vsel %vm86_vm5, %v2369_v54, %v294_v16  ;;  %v642_v8 = vmul.f32 %v96_v35, %v96_v35  ;;  %v3947_v3 = vrot.slane %v2551_v43, 7  ;;  %v4071_v9 = vld [vmem:[#allocation34_spill] sm:$0xff] }
  0xc2   :  { %4068 = vst [vmem:[#allocation19_spill] sm:$0xff] %v2562_v28  ;;  %v335_v30 = vadd.f32 %v319_v19, %v4069_v4  ;;  %v3948_v49 = vrot.slane %v2557_v40, 7  ;;  %v3949_v54 = vrot.slane %v2557_v40, 1  ;;  %v99_v50 = vadd.f32 %v4071_v9, %v4070_v56 }
  0xc3   :  { %v2582_v20 = vpop.permute.xlu0 %291  ;;  %v2591_v59 = vadd.f32 %v731_v52, %v698_v7  ;;  %v100_v48 = vadd.f32 %v2199_v53, %v4074_v26  ;;  %v4075_v35 = vrot.slane %v2423_v51, 7  ;;  %v4076_v19 = vrot.slane %v2421_v61, 7 }
  0xc4   :  { %v2589_v16 = vadd.f32 %v351_v34, %v335_v30  ;;  %v4077_v10 = vrot.slane %v2421_v61, 1  ;;  %v4078_v34 = vrot.slane %v2423_v51, 1  ;;  %v735_v7 = vadd.f32 %v719_v27, %v2467_v11 }
  0xc5   :  { %4073 = vst [vmem:[#allocation13_spill] sm:$0xff] %v2591_v59  ;;  %v667_v4 = vsel %vm135_vm0, %v4076_v19, %v4075_v35  ;;  %v736_v53 = vadd.f32 %v668_v33, %v2489_v31  ;;  %v752_v30 = vsel %vm84_vm1, %v668_v33, %v708_v42  ;;  %v653_v56 = vrot.slane %v2579_v25, 7 }
  0xc6   :  { %4072 = vst [vmem:[#allocation12_spill] sm:$0xff] %v2589_v16  ;;  %785 = vrot.lane.b32.xlu2 %v2562_v28, %s1771_s0  ;;  %v707_v52 = vsel %vm168_vm2, %v4078_v34, %v4077_v10  ;;  %783 = vrot.lane.b32.xlu1 %v2560_v62, %s1771_s0  ;;  %v661_v9 = vrot.slane %v642_v8, 7  ;;  %v685_v61 = vrot.slane %v2579_v25, 1  ;;  %v693_v35 = vrot.slane %v642_v8, 1 }
  0xc7   :  { %v678_v11 = vsel %vm135_vm0, %v3948_v49, %v3947_v3  ;;  %v4080_v31 = vrot.slane %v2551_v43, 1  ;;  %v645_v27 = vmul.f32 %v99_v50, %v99_v50  ;;  %v734_v10 = vadd.f32 %v667_v4, %v2423_v51  ;;  %v4082_v50 = vld [vmem:[#allocation24_spill] sm:$0xff] }
  0xc8   :  { %v2617_v26 = vpop.permute.xlu2 %511  ;;  %v300_v42 = vpop.permute.xlu1 %299  ;;  %v646_v19 = vmul.f32 %v100_v48, %v100_v48  ;;  %v750_v49 = vsel %vm84_vm1, %v667_v4, %v707_v52  ;;  %v2645_v51 = vadd.f32 %v735_v7, %v700_v58  ;;  %v677_v48 = vsel %vm135_vm0, %v661_v9, %v653_v56 }
  0xc9   :  { %4079 = vst [vmem:[#allocation30_spill] sm:$0xff] %v2617_v26  ;;  %v702_v33 = vsel %vm168_vm2, %v4080_v31, %v3949_v54  ;;  %781 = vrot.lane.b32.xlu0 %v2591_v59, %s1771_s0  ;;  %v322_v34 = vsel %vm85_vm4, %v300_v42, %v2390_v0  ;;  %v354_v3 = vsel %vm86_vm5, %v2390_v0, %v300_v42 }
  0xca   :  { %v2642_v31 = vadd.f32 %v752_v30, %v736_v53  ;;  %v338_v54 = vadd.f32 %v322_v34, %v4082_v50  ;;  %4083 = vst [vmem:[#allocation20_spill] sm:$0xff] %v2645_v51  ;;  %v723_v47 = vsel %vm81_vm3, %v702_v33, %v678_v11  ;;  %v701_v0 = vsel %vm168_vm2, %v685_v61, %v693_v35 }
  0xcb   :  { %v2651_v16 = vpop.permute.xlu0 %297  ;;  %v669_v4 = vsel %vm135_vm0, %v653_v56, %v661_v9  ;;  %v709_v52 = vsel %vm168_vm2, %v693_v35, %v685_v61  ;;  %v655_v53 = vrot.slane %v645_v27, 7  ;;  %v663_v7 = vrot.slane %v646_v19, 7  ;;  %v4088_v35 = vld [vmem:[#allocation17_spill] sm:$0xff] }
  0xcc   :  { %4081 = vst [vmem:[#allocation22_spill] sm:$0xff] %v2642_v31  ;;  %v2659_v58 = vadd.f32 %v354_v3, %v338_v54  ;;  %v687_v30 = vrot.slane %v645_v27, 1  ;;  %v695_v42 = vrot.slane %v646_v19, 1  ;;  %v2661_v34 = vadd.f32 %v750_v49, %v734_v10  ;;  %v4087_v54 = vld [vmem:[#allocation16_spill] sm:$0xff] }
  0xcd   :  { %v739_v11 = vadd.f32 %v723_v47, %v2551_v43  ;;  %v721_v56 = vsel %vm81_vm3, %v701_v0, %v677_v48  ;;  %v738_v9 = vadd.f32 %v669_v4, %v642_v8  ;;  %v754_v3 = vsel %vm84_vm1, %v669_v4, %v709_v52  ;;  %v4090_v4 = vld [vmem:[#allocation26_spill] sm:$0xff] }
  0xce   :  { %4084 = vst [vmem:[#allocation34_spill] sm:$0xff] %v2659_v58  ;;  %791 = vrot.lane.b32.xlu2 %v2642_v31, %s1771_s0  ;;  %789 = vrot.lane.b32.xlu1 %v2645_v51, %s1771_s0  ;;  %v101_v49 = vadd.f32 %v2257_v44, %v4087_v54  ;;  %v102_v10 = vadd.f32 %v2259_v46, %v4088_v35 }
  0xcf   :  { %4085 = vst [vmem:[#allocation21_spill] sm:$0xff] %v2661_v34  ;;  %v679_v47 = vsel %vm135_vm0, %v663_v7, %v655_v53  ;;  %v703_v58 = vsel %vm168_vm2, %v687_v30, %v695_v42  ;;  %v737_v46 = vadd.f32 %v721_v56, %v2579_v25  ;;  %v2691_v48 = vadd.f32 %v739_v11, %v702_v33 }
  0xd0   :  { %v2670_v61 = vpop.permute.xlu2 %517  ;;  %v306_v50 = vpop.permute.xlu1 %305  ;;  %v2694_v54 = vadd.f32 %v754_v3, %v738_v9  ;;  %v671_v35 = vsel %vm135_vm0, %v655_v53, %v663_v7  ;;  %v725_v26 = vsel %vm81_vm3, %v703_v58, %v679_v47  ;;  %v711_v45 = vsel %vm168_vm2, %v695_v42, %v687_v30 }
  0xd1   :  { %4086 = vst [vmem:[#allocation24_spill] sm:$0xff] %v2670_v61  ;;  %787 = vrot.lane.b32.xlu0 %v2661_v34, %s1771_s0  ;;  %v325_v8 = vsel %vm85_vm4, %v306_v50, %v2417_v41  ;;  %v357_v44 = vsel %vm86_vm5, %v2417_v41, %v306_v50  ;;  %v647_v41 = vmul.f32 %v101_v49, %v101_v49  ;;  %v4092_v53 = vrot.slane %v2557_v40, 7 }
  0xd2   :  { %4089 = vst [vmem:[#allocation16_spill] sm:$0xff] %v2691_v48  ;;  %v341_v52 = vadd.f32 %v325_v8, %v4090_v4  ;;  %v648_v50 = vmul.f32 %v102_v10, %v102_v10  ;;  %v2706_v33 = vadd.f32 %v737_v46, %v701_v0  ;;  %v742_v11 = vadd.f32 %v671_v35, %v646_v19  ;;  %v4097_v46 = vld [vmem:[#allocation27_spill] sm:$0xff] }
  0xd3   :  { %v2698_v61 = vpop.permute.xlu0 %303  ;;  %v4093_v7 = vrot.slane %v2551_v43, 7  ;;  %v4094_v42 = vrot.slane %v2551_v43, 1  ;;  %v4095_v56 = vrot.slane %v2557_v40, 1  ;;  %v741_v9 = vadd.f32 %v725_v26, %v645_v27 }
  0xd4   :  { %v2704_v25 = vadd.f32 %v357_v44, %v341_v52  ;;  %4091 = vst [vmem:[#allocation17_spill] sm:$0xff] %v2706_v33  ;;  %v758_v19 = vsel %vm84_vm1, %v671_v35, %v711_v45  ;;  %v656_v49 = vrot.slane %v647_v41, 7  ;;  %v664_v10 = vrot.slane %v648_v50, 7 }
  0xd5   :  { %v670_v30 = vsel %vm135_vm0, %v4093_v7, %v4092_v53  ;;  %v710_v0 = vsel %vm168_vm2, %v4095_v56, %v4094_v42  ;;  %v688_v47 = vrot.slane %v647_v41, 1  ;;  %v696_v8 = vrot.slane %v648_v50, 1 }
  0xd6   :  { %797 = vrot.lane.b32.xlu2 %v2691_v48, %s1771_s0  ;;  %795 = vrot.lane.b32.xlu1 %v2694_v54, %s1771_s0  ;;  %v740_v45 = vadd.f32 %v670_v30, %v2557_v40  ;;  %v2737_v27 = vadd.f32 %v758_v19, %v742_v11  ;;  %v756_v52 = vsel %vm84_vm1, %v670_v30, %v710_v0 }
  0xd7   :  { %v2742_v35 = vadd.f32 %v741_v9, %v703_v58  ;;  %v680_v7 = vsel %vm135_vm0, %v664_v10, %v656_v49  ;;  %v704_v42 = vsel %vm168_vm2, %v688_v47, %v696_v8  ;;  %v712_v11 = vsel %vm168_vm2, %v696_v8, %v688_v47 }
  0xd8   :  { %v2726_v3 = vpop.permute.xlu2 %523  ;;  %v312_v44 = vpop.permute.xlu1 %311  ;;  %4096 = vst [vmem:[#allocation26_spill] sm:$0xff] %v2737_v27  ;;  %v2756_v56 = vadd.f32 %v756_v52, %v740_v45  ;;  %v727_v58 = vsel %vm81_vm3, %v704_v42, %v680_v7  ;;  %v4100_v45 = vld [vmem:[#allocation33_spill] sm:$0xff]  ;;  %v1669_v52 = vld [vmem:[#allocation2 + $0x8] sm:$0xff] }
  0xd9   :  { %793 = vrot.lane.b32.xlu0 %v2706_v33, %s1771_s0  ;;  %v328_v43 = vsel %vm85_vm4, %v312_v44, %v2462_v39  ;;  %v360_v26 = vsel %vm86_vm5, %v2462_v39, %v312_v44  ;;  %4098 = vst [vmem:[#allocation27_spill] sm:$0xff] %v2742_v35  ;;  %v672_v39 = vsel %vm135_vm0, %v656_v49, %v664_v10 }
  0xda   :  { %v344_v4 = vadd.f32 %v328_v43, %v4097_v46  ;;  %4099 = vst [vmem:[#allocation53_spill] sm:$0xff] %v2756_v56  ;;  %v744_v30 = vadd.f32 %v672_v39, %v648_v50  ;;  %v760_v9 = vsel %vm84_vm1, %v672_v39, %v712_v11  ;;  %v743_v49 = vadd.f32 %v727_v58, %v647_v41  ;;  %v1668_v41 = vld [vmem:[#allocation2] sm:$0xff]  ;;  %v1670_v58 = vld [vmem:[#allocation2 + $0x10] sm:$0xff] }
  0xdb   :  { %v2744_v53 = vpop.permute.xlu0 %309  ;;  %v318_v46 = vsel %vm85_vm4, %v2582_v20, %v4100_v45  ;;  %v104_v7 = vsub.f32 %v1669_v52, %v2067_v38  ;;  %v4101_v38 = vld [vmem:[#allocation11_spill] sm:$0xff] }
  0xdc   :  { %v2752_v40 = vadd.f32 %v360_v26, %v344_v4  ;;  %v2770_v10 = vadd.f32 %v760_v9, %v744_v30  ;;  %v2774_v8 = vadd.f32 %v743_v49, %v704_v42  ;;  %v103_v26 = vsub.f32 %v1668_v41, %v2065_v37  ;;  %v1671_v30 = vld [vmem:[#allocation2 + $0x18] sm:$0xff] }
  0xdd   :  { %v105_v37 = vsub.f32 %v1670_v58, %v2083_v57  ;;  %v106_v9 = vsub.f32 %v1671_v30, %v2085_v63  ;;  %v334_v41 = vadd.f32 %v318_v46, %v4101_v38  ;;  %v2816_v57 = vmul.f32 %v104_v7, %v104_v7 }
  0xde   :  { %803 = vrot.lane.b32.xlu2 %v2737_v27, %s1771_s0  ;;  %801 = vrot.lane.b32.xlu1 %v2742_v35, %s1771_s0  ;;  %v2808_v52 = vmul.f32 %v103_v26, %v103_v26  ;;  %v350_v26 = vsel %vm86_vm5, %v4100_v45, %v2582_v20 }
  0xdf   :  { %v2818_v63 = vmul.f32 %v105_v37, %v105_v37  ;;  %v2820_v58 = vmul.f32 %v106_v9, %v106_v9  ;;  %v366_v7 = vadd.f32 %v350_v26, %v334_v41  ;;  %v929_v20 = vrot.slane %v2816_v57, 7 }
  0xe0   :  { %v2764_v0 = vpop.permute.xlu2 %529  ;;  %v510_v19 = vpop.permute.xlu1 %509  ;;  %v921_v30 = vrot.slane %v2808_v52, 7  ;;  %v961_v45 = vrot.slane %v2816_v57, 1 }
  0xe1   :  { %799 = vrot.lane.b32.xlu0 %v2756_v56, %s1771_s0 }
  0xe3   :  { %v2772_v47 = vpop.permute.xlu0 %507 }
  0xe6   :  { %809 = vrot.lane.b32.xlu2 %v2485_v5, %s1772_s1  ;;  %807 = vrot.lane.b32.xlu1 %v2770_v10, %s1771_s0 }
  0xe8   :  { %v2780_v50 = vpop.permute.xlu2 %535  ;;  %v516_v44 = vpop.permute.xlu1 %515 }
  0xe9   :  { %805 = vrot.lane.b32.xlu0 %v2774_v8, %s1771_s0 }
  0xeb   :  { %v2784_v43 = vpop.permute.xlu0 %513 }
  0xee   :  { %815 = vrot.lane.b32.xlu2 %v2560_v62, %s1772_s1  ;;  %813 = vrot.lane.b32.xlu1 %v2591_v59, %s1772_s1  ;;  %v4102_v59 = vld [vmem:[#allocation41_spill] sm:$0xff] }
  0xf0   :  { %v542_v4 = vpop.permute.xlu2 %541  ;;  %v2796_v42 = vpop.permute.xlu1 %521 }
  0xf1   :  { %v571_v39 = vsel %vm85_vm4, %v542_v4, %v510_v19  ;;  %v603_v11 = vsel %vm86_vm5, %v510_v19, %v542_v4  ;;  %811 = vrot.lane.b32.xlu0 %v2487_v18, %s1772_s1  ;;  %v321_v19 = vsel %vm85_vm4, %v2651_v16, %v4102_v59  ;;  %v1278_v18 = vmul.f32 %v366_v7, %v366_v7 }
  0xf2   :  { %v587_v49 = vadd.f32 %v571_v39, %v2158_v22  ;;  %v1275_v22 = vmul.f32 %v2553_v60, %v2553_v60 }
  0xf3   :  { %v2814_v62 = vpop.permute.xlu0 %519 }
  0xf4   :  { %v619_v4 = vadd.f32 %v603_v11, %v587_v49  ;;  %v4104_v11 = vld [vmem:[#allocation18_spill] sm:$0xff] }
  0xf5   :  { %v337_v37 = vadd.f32 %v321_v19, %v4104_v11 }
  0xf6   :  { %v2829_v46 = vmul.f32 %v619_v4, %v2553_v60  ;;  %v1291_v39 = vmul.f32 %v619_v4, %v619_v4  ;;  %821 = vrot.lane.b32.xlu2 %v2645_v51, %s1772_s1  ;;  %819 = vrot.lane.b32.xlu1 %v2661_v34, %s1772_s1  ;;  %v953_v60 = vrot.slane %v2808_v52, 1  ;;  %v1673_v4 = vld [vmem:[#allocation2 + $0x28] sm:$0xff]  ;;  %v4111_v51 = vld [vmem:[#allocation23_spill] sm:$0xff] }
  0xf8   :  { %4103 = vst [vmem:[#allocation33_spill] sm:$0xff] %v2829_v46  ;;  %v2837_v9 = vadd.f32 %v1291_v39, %v1275_v22  ;;  %v548_v49 = vpop.permute.xlu2 %547  ;;  %v2842_v38 = vpop.permute.xlu1 %527  ;;  %v108_v22 = vsub.f32 %v1673_v4, %v2120_v36  ;;  %v2875_v36 = vsel %vm168_vm2, %v953_v60, %v961_v45 }
  0xf9   :  { %v574_v41 = vsel %vm85_vm4, %v548_v49, %v516_v44  ;;  %v606_v19 = vsel %vm86_vm5, %v516_v44, %v548_v49  ;;  %817 = vrot.lane.b32.xlu0 %v2562_v28, %s1772_s1  ;;  %v1672_v44 = vld [vmem:[#allocation2 + $0x20] sm:$0xff] }
  0xfa   :  { %4105 = vst [vmem:[#allocation11_spill] sm:$0xff] %v2837_v9  ;;  %v590_v26 = vadd.f32 %v574_v41, %v2206_v32  ;;  %v353_v9 = vsel %vm86_vm5, %v4102_v59, %v2651_v16  ;;  %v107_v49 = vsub.f32 %v1672_v44, %v2118_v29  ;;  %v324_v32 = vsel %vm85_vm4, %v2698_v61, %v2322_v55 }
  0xfb   :  { %v369_v46 = vadd.f32 %v353_v9, %v337_v37  ;;  %v327_v41 = vsel %vm85_vm4, %v2744_v53, %v2343_v24  ;;  %v2869_v11 = vpop.permute.xlu0 %525  ;;  %v945_v29 = vsel %vm135_vm0, %v929_v20, %v921_v30  ;;  %v4106_v16 = vrot.slane %v2818_v63, 7 }
  0xfc   :  { %v622_v39 = vadd.f32 %v606_v19, %v590_v26  ;;  %v4107_v59 = vrot.slane %v2820_v58, 7  ;;  %v2883_v9 = vmul.f32 %v107_v49, %v107_v49  ;;  %v4109_v26 = vrot.slane %v2820_v58, 1 }
  0xfd   :  { %v4110_v44 = vrot.slane %v2818_v63, 1  ;;  %v2895_v34 = vmul.f32 %v108_v22, %v108_v22  ;;  %v340_v5 = vadd.f32 %v324_v32, %v4111_v51  ;;  %v937_v51 = vsel %vm135_vm0, %v921_v30, %v929_v20 }
  0xfe   :  { %v946_v37 = vsel %vm135_vm0, %v4107_v59, %v4106_v16  ;;  %v2885_v4 = vmul.f32 %v622_v39, %v366_v7  ;;  %v1294_v19 = vmul.f32 %v622_v39, %v622_v39  ;;  %827 = vrot.lane.b32.xlu2 %v2694_v54, %s1772_s1  ;;  %v356_v7 = vsel %vm86_vm5, %v2322_v55, %v2698_v61  ;;  %v4112_v39 = vld [vmem:[#allocation25_spill] sm:$0xff] }
  0xff   :  { %v970_v28 = vsel %vm168_vm2, %v4110_v44, %v4109_v26  ;;  %v343_v49 = vadd.f32 %v327_v41, %v4112_v39  ;;  %v359_v16 = vsel %vm86_vm5, %v2343_v24, %v2744_v53  ;;  %825 = vrot.lane.b32.xlu1 %v2706_v33, %s1772_s1  ;;  %v977_v32 = vsel %vm168_vm2, %v961_v45, %v953_v60  ;;  %v4114_v26 = vld [vmem:[#allocation48_spill] sm:$0xff] }
 0x100   :  { %4108 = vst [vmem:[#allocation41_spill] sm:$0xff] %v2885_v4  ;;  %v2909_v59 = vadd.f32 %v1294_v19, %v1278_v18  ;;  %v554_v22 = vpop.permute.xlu2 %553  ;;  %v985_v55 = vsel %vm81_vm3, %v2875_v36, %v945_v29  ;;  %v2918_v61 = vpop.permute.xlu1 %533  ;;  %v987_v53 = vsel %vm81_vm3, %v970_v28, %v946_v37  ;;  %v923_v30 = vrot.slane %v2883_v9, 7 }
 0x101   :  { %v577_v24 = vsel %vm85_vm4, %v554_v22, %v2796_v42  ;;  %v609_v18 = vsel %vm86_vm5, %v2796_v42, %v554_v22  ;;  %823 = vrot.lane.b32.xlu0 %v2642_v31, %s1772_s1  ;;  %v931_v60 = vrot.slane %v2895_v34, 7  ;;  %v955_v45 = vrot.slane %v2883_v9, 1 }
 0x102   :  { %4113 = vst [vmem:[#allocation18_spill] sm:$0xff] %v2909_v59  ;;  %v593_v20 = vadd.f32 %v577_v24, %v2261_v21  ;;  %v963_v41 = vrot.slane %v2895_v34, 1  ;;  %v372_v29 = vadd.f32 %v356_v7, %v340_v5  ;;  %v2935_v19 = vadd.f32 %v359_v16, %v343_v49 }
 0x103   :  { %v1002_v42 = vadd.f32 %v937_v51, %v2816_v57  ;;  %v2940_v37 = vmul.f32 %v4114_v26, %v4114_v26  ;;  %v2944_v44 = vmul.f32 %v2388_v6, %v2388_v6  ;;  %v2946_v39 = vpop.permute.xlu0 %531  ;;  %v1018_v22 = vsel %vm84_vm1, %v937_v51, %v977_v32 }
 0x104   :  { %v625_v21 = vadd.f32 %v609_v18, %v593_v20  ;;  %v2952_v5 = vmul.f32 %v2465_v23, %v2465_v23  ;;  %v1281_v7 = vmul.f32 %v369_v46, %v369_v46  ;;  %v1001_v57 = vadd.f32 %v985_v55, %v2808_v52 }
 0x105   :  { %v1003_v49 = vadd.f32 %v987_v53, %v2818_v63  ;;  %v947_v18 = vsel %vm135_vm0, %v931_v60, %v923_v30  ;;  %v971_v51 = vsel %vm168_vm2, %v955_v45, %v963_v41  ;;  %v2966_v32 = vmul.f32 %v2525_v12, %v2525_v12 }
 0x106   :  { %v2956_v16 = vmul.f32 %v625_v21, %v369_v46  ;;  %v1297_v24 = vmul.f32 %v625_v21, %v625_v21  ;;  %833 = vrot.lane.b32.xlu2 %v2742_v35, %s1772_s1  ;;  %v1284_v20 = vmul.f32 %v372_v29, %v372_v29  ;;  %v2970_v52 = vmul.f32 %v2935_v19, %v2935_v19 }
 0x107   :  { %831 = vrot.lane.b32.xlu1 %v2756_v56, %s1772_s1  ;;  %v2974_v46 = vadd.f32 %v1018_v22, %v1002_v42  ;;  %v4117_v21 = vrot.slane %v2820_v58, 7  ;;  %v4118_v31 = vrot.slane %v2818_v63, 7  ;;  %v4120_v4 = vrot.slane %v2820_v58, 1  ;;  %v1674_v56 = vld [vmem:[#allocation2 + $0x30] sm:$0xff] }
 0x108   :  { %4115 = vst [vmem:[#allocation23_spill] sm:$0xff] %v2956_v16  ;;  %v2976_v55 = vadd.f32 %v1297_v24, %v1281_v7  ;;  %v560_v53 = vpop.permute.xlu2 %559  ;;  %v4119_v16 = vrot.slane %v2818_v63, 1  ;;  %v109_v42 = vsub.f32 %v1674_v56, %v2104_v13  ;;  %v540_v22 = vpop.permute.xlu1 %539  ;;  %v1675_v63 = vld [vmem:[#allocation2 + $0x38] sm:$0xff] }
 0x109   :  { %v938_v59 = vsel %vm135_vm0, %v4118_v31, %v4117_v21  ;;  %v580_v7 = vsel %vm85_vm4, %v560_v53, %v2842_v38  ;;  %v612_v24 = vsel %vm86_vm5, %v2842_v38, %v560_v53  ;;  %v989_v31 = vsel %vm81_vm3, %v971_v51, %v947_v18  ;;  %829 = vrot.lane.b32.xlu0 %v2691_v48, %s1772_s1  ;;  %v4122_v53 = vld [vmem:[#allocation43_spill] sm:$0xff] }
 0x10a   :  { %4116 = vst [vmem:[#allocation25_spill] sm:$0xff] %v2976_v55  ;;  %v978_v33 = vsel %vm168_vm2, %v4120_v4, %v4119_v16  ;;  %v110_v21 = vsub.f32 %v1675_v63, %v2106_v15  ;;  %v570_v13 = vsel %vm85_vm4, %v540_v22, %v2772_v47  ;;  %v602_v56 = vsel %vm86_vm5, %v2772_v47, %v540_v22  ;;  %v4121_v16 = vld [vmem:[#allocation32_spill] sm:$0xff] }
 0x10b   :  { %v3009_v4 = vadd.f32 %v1001_v57, %v2875_v36  ;;  %v3011_v38 = vadd.f32 %v1003_v49, %v970_v28  ;;  %v586_v18 = vadd.f32 %v570_v13, %v4121_v16  ;;  %v596_v15 = vadd.f32 %v580_v7, %v4122_v53  ;;  %v538_v55 = vpop.permute.xlu0 %537  ;;  %v1677_v13 = vld [vmem:[#allocation2 + $0x48] sm:$0xff] }
 0x10c   :  { %v3016_v63 = vadd.f32 %v938_v59, %v2820_v58  ;;  %v939_v48 = vsel %vm135_vm0, %v923_v30, %v931_v60  ;;  %v1005_v35 = vadd.f32 %v989_v31, %v2883_v9  ;;  %v3023_v47 = vsel %vm84_vm1, %v938_v59, %v978_v33  ;;  %v4123_v30 = vld [vmem:[#allocation28_spill] sm:$0xff]  ;;  %v1676_v59 = vld [vmem:[#allocation2 + $0x40] sm:$0xff] }
 0x10d   :  { %v979_v28 = vsel %vm168_vm2, %v963_v41, %v955_v45  ;;  %v3027_v36 = vmul.f32 %v109_v42, %v109_v42  ;;  %v618_v57 = vadd.f32 %v602_v56, %v586_v18  ;;  %v628_v49 = vadd.f32 %v612_v24, %v596_v15  ;;  %v4124_v45 = vld [vmem:[#allocation29_spill] sm:$0xff]  ;;  %v1678_v56 = vld [vmem:[#allocation5 + $0x48] sm:$0xff] }
 0x10e   :  { %v569_v58 = vsel %vm85_vm4, %v538_v55, %v2555_v14  ;;  %v3032_v22 = vmul.f32 %v110_v21, %v110_v21  ;;  %v601_v33 = vsel %vm86_vm5, %v2555_v14, %v538_v55  ;;  %839 = vrot.lane.b32.xlu2 %v2770_v10, %s1772_s1  ;;  %v1006_v9 = vadd.f32 %v939_v48, %v2895_v34 }
 0x10f   :  { %v585_v60 = vadd.f32 %v569_v58, %v4123_v30  ;;  %v111_v41 = vsub.f32 %v1676_v59, %v4124_v45  ;;  %v3043_v42 = vmul.f32 %v618_v57, %v4114_v26  ;;  %v1290_v7 = vmul.f32 %v618_v57, %v618_v57  ;;  %837 = vrot.lane.b32.xlu1 %v2774_v8, %s1772_s1  ;;  %v4128_v58 = vld [vmem:[#allocation36_spill] sm:$0xff] }
 0x110   :  { %v3045_v24 = vmul.f32 %v628_v49, %v372_v29  ;;  %v1300_v31 = vmul.f32 %v628_v49, %v628_v49  ;;  %v566_v14 = vpop.permute.xlu2 %565  ;;  %v3049_v55 = vadd.f32 %v1005_v35, %v971_v51  ;;  %v1022_v34 = vsel %vm84_vm1, %v939_v48, %v979_v28  ;;  %v546_v29 = vpop.permute.xlu1 %545  ;;  %v4126_v51 = vld [vmem:[#allocation38_spill] sm:$0xff] }
 0x111   :  { %v617_v21 = vadd.f32 %v601_v33, %v585_v60  ;;  %v112_v16 = vsub.f32 %v1677_v13, %v1678_v56  ;;  %v3054_v26 = vadd.f32 %v1290_v7, %v2940_v37  ;;  %v924_v53 = vrot.slane %v3027_v36, 7  ;;  %835 = vrot.lane.b32.xlu0 %v2737_v27, %s1772_s1  ;;  %v4129_v7 = vld [vmem:[#allocation37_spill] sm:$0xff]  ;;  %v4131_v13 = vld [vmem:[#allocation30_spill] sm:$0xff]  ;;  %v4132_v56 = vld [vmem:[#allocation31_spill] sm:$0xff] }
 0x112   :  { %v3056_v18 = vadd.f32 %v1300_v31, %v1284_v20  ;;  %v932_v15 = vrot.slane %v3032_v22, 7  ;;  %v573_v48 = vsel %vm85_vm4, %v546_v29, %v2784_v43  ;;  %v605_v37 = vsel %vm86_vm5, %v2784_v43, %v546_v29  ;;  %v1680_v43 = vld [vmem:[#allocation2 + $0x58] sm:$0xff]  ;;  %v4140_v27 = vld [vmem:[#allocation35_spill] sm:$0xff] }
 0x113   :  { %v3061_v57 = vmul.f32 %v617_v21, %v2465_v23  ;;  %v1289_v35 = vmul.f32 %v617_v21, %v617_v21  ;;  %v589_v20 = vadd.f32 %v573_v48, %v4126_v51  ;;  %v3072_v28 = vadd.f32 %v1022_v34, %v1006_v9  ;;  %v1679_v23 = vld [vmem:[#allocation2 + $0x50] sm:$0xff]  ;;  %v544_v59 = vpop.permute.xlu0 %543  ;;  %v4130_v21 = vld [vmem:[#allocation46_spill] sm:$0xff] }
 0x114   :  { %4125 = vst [vmem:[#allocation48_spill] sm:$0xff] %v3056_v18  ;;  %v3074_v49 = vmul.f32 %v111_v41, %v111_v41  ;;  %v113_v30 = vsub.f32 %v1679_v23, %v4128_v58  ;;  %v583_v33 = vsel %vm85_vm4, %v566_v14, %v2918_v61  ;;  %v3083_v45 = vmul.f32 %v112_v16, %v112_v16 }
 0x115   :  { %4127 = vst [vmem:[#allocation32_spill] sm:$0xff] %v3072_v28  ;;  %v3078_v60 = vadd.f32 %v1289_v35, %v2952_v5  ;;  %v114_v31 = vsub.f32 %v1680_v43, %v4129_v7  ;;  %v621_v9 = vadd.f32 %v605_v37, %v589_v20  ;;  %v599_v41 = vadd.f32 %v583_v33, %v4130_v21 }
 0x116   :  { %v615_v34 = vsel %vm86_vm5, %v2918_v61, %v566_v14  ;;  %v572_v5 = vsel %vm85_vm4, %v544_v59, %v4131_v13  ;;  %1053 = vrot.lane.b32.xlu2 %v3011_v38, %s1771_s0  ;;  %v940_v16 = vsel %vm135_vm0, %v924_v53, %v932_v15  ;;  %v956_v35 = vrot.slane %v3027_v36, 1 }
 0x117   :  { %v588_v29 = vadd.f32 %v572_v5, %v4132_v56  ;;  %v964_v48 = vrot.slane %v3032_v22, 1  ;;  %v3101_v37 = vmul.f32 %v621_v9, %v2388_v6  ;;  %v1293_v61 = vmul.f32 %v621_v9, %v621_v9  ;;  %1051 = vrot.lane.b32.xlu1 %v2974_v46, %s1771_s0  ;;  %v4135_v5 = vld [vmem:[#allocation49_spill] sm:$0xff] }
 0x118   :  { %v631_v14 = vadd.f32 %v615_v34, %v599_v41  ;;  %v604_v51 = vsel %vm86_vm5, %v4131_v13, %v544_v59  ;;  %v3108_v23 = vpop.permute.xlu2 %779  ;;  %v948_v33 = vsel %vm135_vm0, %v932_v15, %v924_v53  ;;  %v925_v6 = vrot.slane %v3074_v49, 7  ;;  %v552_v9 = vpop.permute.xlu1 %551 }
 0x119   :  { %v620_v20 = vadd.f32 %v604_v51, %v588_v29  ;;  %v980_v58 = vsel %vm168_vm2, %v964_v48, %v956_v35  ;;  %v3116_v43 = vadd.f32 %v1293_v61, %v2944_v44  ;;  %v933_v21 = vrot.slane %v3083_v45, 7  ;;  %1049 = vrot.lane.b32.xlu0 %v3009_v4, %s1771_s0  ;;  %v4136_v29 = vld [vmem:[#allocation12_spill] sm:$0xff] }
 0x11a   :  { %v3119_v7 = vmul.f32 %v631_v14, %v2935_v19  ;;  %v1303_v59 = vmul.f32 %v631_v14, %v631_v14  ;;  %v576_v53 = vsel %vm85_vm4, %v552_v9, %v2814_v62  ;;  %v608_v19 = vsel %vm86_vm5, %v2814_v62, %v552_v9  ;;  %v4138_v62 = vld [vmem:[#allocation40_spill] sm:$0xff] }
 0x11b   :  { %4133 = vst [vmem:[#allocation43_spill] sm:$0xff] %v3116_v43  ;;  %v3123_v41 = vmul.f32 %v620_v20, %v2525_v12  ;;  %v1292_v34 = vmul.f32 %v620_v20, %v620_v20  ;;  %v972_v15 = vsel %vm168_vm2, %v956_v35, %v964_v48  ;;  %v957_v12 = vrot.slane %v3074_v49, 1  ;;  %v4139_v20 = vld [vmem:[#allocation24_spill] sm:$0xff] }
 0x11c   :  { %v3134_v44 = vadd.f32 %v1303_v59, %v2970_v52  ;;  %v965_v13 = vrot.slane %v3083_v45, 1  ;;  %v1280_v56 = vmul.f32 %v4135_v5, %v4135_v5  ;;  %v1279_v61 = vmul.f32 %v4136_v29, %v4136_v29  ;;  %v550_v52 = vpop.permute.xlu0 %549 }
 0x11d   :  { %v3145_v14 = vadd.f32 %v1292_v34, %v2966_v32  ;;  %v592_v51 = vadd.f32 %v576_v53, %v4138_v62  ;;  %v575_v35 = vsel %vm85_vm4, %v550_v52, %v4139_v20  ;;  %v3153_v48 = vadd.f32 %v3023_v47, %v3016_v63 }
 0x11e   :  { %4134 = vst [vmem:[#allocation28_spill] sm:$0xff] %v3134_v44  ;;  %v1008_v59 = vadd.f32 %v940_v16, %v3032_v22  ;;  %v949_v9 = vsel %vm135_vm0, %v933_v21, %v925_v6  ;;  %v591_v32 = vadd.f32 %v575_v35, %v4140_v27  ;;  %1059 = vrot.lane.b32.xlu2 %v3072_v28, %s1771_s0 }
 0x11f   :  { %4137 = vst [vmem:[#allocation29_spill] sm:$0xff] %v3145_v14  ;;  %v624_v44 = vadd.f32 %v608_v19, %v592_v51  ;;  %v1024_v34 = vsel %vm84_vm1, %v940_v16, %v980_v58  ;;  %v991_v53 = vsel %vm81_vm3, %v972_v15, %v948_v33  ;;  %v607_v63 = vsel %vm86_vm5, %v4139_v20, %v550_v52 }
 0x120   :  { %1057 = vrot.lane.b32.xlu1 %v3049_v55, %s1771_s0  ;;  %v973_v47 = vsel %vm168_vm2, %v957_v12, %v965_v13  ;;  %v915_v27 = vmul.f32 %v113_v30, %v113_v30  ;;  %v916_v22 = vmul.f32 %v114_v31, %v114_v31  ;;  %v623_v16 = vadd.f32 %v607_v63, %v591_v32  ;;  %v3175_v58 = vpop.permute.xlu2 %785  ;;  %v558_v51 = vpop.permute.xlu1 %557 }
 0x121   :  { %v3173_v19 = vmul.f32 %v624_v44, %v4135_v5  ;;  %v1296_v62 = vmul.f32 %v624_v44, %v624_v44  ;;  %v993_v33 = vsel %vm81_vm3, %v973_v47, %v949_v9  ;;  %v3179_v52 = vadd.f32 %v1024_v34, %v1008_v59  ;;  %1055 = vrot.lane.b32.xlu0 %v3153_v48, %s1771_s0  ;;  %v4143_v34 = vld [vmem:[#allocation44_spill] sm:$0xff] }
 0x122   :  { %v1009_v20 = vadd.f32 %v993_v33, %v3074_v49  ;;  %v926_v35 = vrot.slane %v915_v27, 7  ;;  %v934_v14 = vrot.slane %v916_v22, 7  ;;  %v3185_v30 = vmul.f32 %v623_v16, %v4136_v29  ;;  %v4146_v33 = vld [vmem:[#allocation39_spill] sm:$0xff] }
 0x123   :  { %v3182_v43 = vadd.f32 %v1296_v62, %v1280_v56  ;;  %v1295_v31 = vmul.f32 %v623_v16, %v623_v16  ;;  %v1007_v44 = vadd.f32 %v991_v53, %v3027_v36  ;;  %v579_v5 = vsel %vm85_vm4, %v558_v51, %v2869_v11  ;;  %v4145_v16 = vld [vmem:[#allocation34_spill] sm:$0xff] }
 0x124   :  { %v611_v49 = vsel %vm86_vm5, %v2869_v11, %v558_v51  ;;  %v3196_v59 = vadd.f32 %v1009_v20, %v973_v47  ;;  %v958_v56 = vrot.slane %v915_v27, 1  ;;  %v556_v29 = vpop.permute.xlu0 %555  ;;  %v941_v32 = vsel %vm135_vm0, %v925_v6, %v933_v21  ;;  %v4144_v11 = vld [vmem:[#allocation50_spill] sm:$0xff] }
 0x125   :  { %v3198_v9 = vadd.f32 %v1295_v31, %v1279_v61  ;;  %v595_v63 = vadd.f32 %v579_v5, %v4143_v34  ;;  %v578_v36 = vsel %vm85_vm4, %v556_v29, %v2726_v3  ;;  %v950_v53 = vsel %vm135_vm0, %v934_v14, %v926_v35 }
 0x126   :  { %4141 = vst [vmem:[#allocation38_spill] sm:$0xff] %v3196_v59  ;;  %v966_v62 = vrot.slane %v916_v22, 1  ;;  %v1283_v47 = vmul.f32 %v4144_v11, %v4144_v11  ;;  %v1282_v61 = vmul.f32 %v4145_v16, %v4145_v16  ;;  %v594_v51 = vadd.f32 %v578_v36, %v4146_v33  ;;  %1065 = vrot.lane.b32.xlu2 %v3196_v59, %s1771_s0 }
 0x127   :  { %4142 = vst [vmem:[#allocation36_spill] sm:$0xff] %v3198_v9  ;;  %v3213_v20 = vadd.f32 %v1007_v44, %v972_v15  ;;  %v627_v6 = vadd.f32 %v611_v49, %v595_v63  ;;  %v610_v21 = vsel %vm86_vm5, %v2726_v3, %v556_v29  ;;  %v981_v5 = vsel %vm168_vm2, %v965_v13, %v957_v12 }
 0x128   :  { %1063 = vrot.lane.b32.xlu1 %v3179_v52, %s1771_s0  ;;  %v974_v31 = vsel %vm168_vm2, %v958_v56, %v966_v62  ;;  %v626_v34 = vadd.f32 %v610_v21, %v594_v51  ;;  %v3226_v15 = vpop.permute.xlu2 %791  ;;  %v1010_v49 = vadd.f32 %v941_v32, %v3083_v45  ;;  %v942_v3 = vsel %vm135_vm0, %v926_v35, %v934_v14  ;;  %v564_v36 = vpop.permute.xlu1 %563 }
 0x129   :  { %4147 = vst [vmem:[#allocation37_spill] sm:$0xff] %v3213_v20  ;;  %v995_v44 = vsel %vm81_vm3, %v974_v31, %v950_v53  ;;  %v3234_v29 = vmul.f32 %v627_v6, %v4144_v11  ;;  %v1299_v63 = vmul.f32 %v627_v6, %v627_v6  ;;  %v982_v12 = vsel %vm168_vm2, %v966_v62, %v958_v56 }
 0x12a   :  { %v1011_v33 = vadd.f32 %v995_v44, %v915_v27  ;;  %v3239_v13 = vmul.f32 %v626_v34, %v4145_v16  ;;  %v1298_v51 = vmul.f32 %v626_v34, %v626_v34  ;;  %1061 = vrot.lane.b32.xlu0 %v3213_v20, %s1771_s0  ;;  %v582_v45 = vsel %vm85_vm4, %v564_v36, %v2946_v39  ;;  %v4149_v27 = vld [vmem:[#allocation47_spill] sm:$0xff] }
 0x12b   :  { %v614_v14 = vsel %vm86_vm5, %v2946_v39, %v564_v36  ;;  %v3249_v35 = vadd.f32 %v1299_v63, %v1283_v47  ;;  %v598_v53 = vadd.f32 %v582_v45, %v4149_v27  ;;  %v1026_v62 = vsel %vm84_vm1, %v941_v32, %v981_v5  ;;  %v4151_v47 = vld [vmem:[#allocation14_spill] sm:$0xff]  ;;  %v1681_v36 = vld [vmem:[#allocation2 + $0x60] sm:$0xff]  ;;  %v1684_v27 = vld [vmem:[#allocation5 + $0x68] sm:$0xff] }
 0x12c   :  { %v3252_v56 = vadd.f32 %v1011_v33, %v974_v31  ;;  %v3256_v11 = vadd.f32 %v1298_v51, %v1282_v61  ;;  %v562_v16 = vpop.permute.xlu0 %561  ;;  %v1012_v6 = vadd.f32 %v942_v3, %v916_v22  ;;  %v1028_v21 = vsel %vm84_vm1, %v942_v3, %v982_v12  ;;  %v4152_v31 = vld [vmem:[#allocation42_spill] sm:$0xff]  ;;  %v1682_v33 = vld [vmem:[#allocation5 + $0x60] sm:$0xff] }
 0x12d   :  { %4148 = vst [vmem:[#allocation46_spill] sm:$0xff] %v3249_v35  ;;  %v630_v34 = vadd.f32 %v614_v14, %v598_v53  ;;  %v581_v39 = vsel %vm85_vm4, %v562_v16, %v2764_v0  ;;  %v1286_v44 = vmul.f32 %v4151_v47, %v4151_v47  ;;  %v613_v32 = vsel %vm86_vm5, %v2764_v0, %v562_v16  ;;  %v1683_v14 = vld [vmem:[#allocation2 + $0x68] sm:$0xff]  ;;  %v1686_v53 = vld [vmem:[#allocation5 + $0x70] sm:$0xff] }
 0x12e   :  { %4150 = vst [vmem:[#allocation30_spill] sm:$0xff] %v3256_v11  ;;  %v597_v63 = vadd.f32 %v581_v39, %v4152_v31  ;;  %v3269_v61 = vadd.f32 %v1026_v62, %v1010_v49  ;;  %v3276_v3 = vadd.f32 %v1028_v21, %v1012_v6  ;;  %v115_v12 = vsub.f32 %v1681_v36, %v1682_v33  ;;  %v1685_v49 = vld [vmem:[#allocation2 + $0x70] sm:$0xff]  ;;  %v1687_v39 = vld [vmem:[#allocation2 + $0x78] sm:$0xff] }
 0x12f   :  { %v3272_v22 = vmul.f32 %v630_v34, %v4151_v47  ;;  %v1302_v5 = vmul.f32 %v630_v34, %v630_v34  ;;  %v116_v0 = vsub.f32 %v1683_v14, %v1684_v27  ;;  %v117_v62 = vsub.f32 %v1685_v49, %v1686_v53  ;;  %v1688_v47 = vld [vmem:[#allocation5 + $0x78] sm:$0xff] }
 0x130   :  { %4153 = vst [vmem:[#allocation31_spill] sm:$0xff] %v3269_v61  ;;  %1069 = vrot.lane.b32.xlu1 %v3252_v56, %s1771_s0  ;;  %v629_v51 = vadd.f32 %v613_v32, %v597_v63  ;;  %v3278_v45 = vpop.permute.xlu2 %797  ;;  %v1285_v16 = vmul.f32 %v2704_v25, %v2704_v25  ;;  %1071 = vrot.lane.b32.xlu2 %v3276_v3, %s1771_s0  ;;  %v778_v6 = vpop.permute.xlu1 %777 }
 0x131   :  { %4154 = vst [vmem:[#allocation49_spill] sm:$0xff] %v3272_v22  ;;  %v3282_v34 = vadd.f32 %v1302_v5, %v1286_v44  ;;  %v917_v21 = vmul.f32 %v115_v12, %v115_v12  ;;  %v118_v31 = vsub.f32 %v1687_v39, %v1688_v47  ;;  %v918_v36 = vmul.f32 %v116_v0, %v116_v0  ;;  %v4160_v39 = vld [vmem:[#allocation45_spill] sm:$0xff] }
 0x132   :  { %4155 = vst [vmem:[#allocation12_spill] sm:$0xff] %v3276_v3  ;;  %v3287_v63 = vmul.f32 %v629_v51, %v2704_v25  ;;  %v1301_v32 = vmul.f32 %v629_v51, %v629_v51  ;;  %1067 = vrot.lane.b32.xlu0 %v3269_v61, %s1771_s0  ;;  %v919_v33 = vmul.f32 %v117_v62, %v117_v62 }
 0x133   :  { %4156 = vst [vmem:[#allocation40_spill] sm:$0xff] %v3278_v45  ;;  %v927_v14 = vrot.slane %v917_v21, 7  ;;  %v959_v44 = vrot.slane %v917_v21, 1  ;;  %v935_v49 = vrot.slane %v918_v36, 7  ;;  %v967_v53 = vrot.slane %v918_v36, 1 }
 0x134   :  { %4157 = vst [vmem:[#allocation24_spill] sm:$0xff] %v3282_v34  ;;  %v3291_v5 = vadd.f32 %v1301_v32, %v1285_v16  ;;  %v568_v27 = vpop.permute.xlu0 %567  ;;  %v1288_v12 = vmul.f32 %v2752_v40, %v2752_v40  ;;  %v920_v51 = vmul.f32 %v118_v31, %v118_v31  ;;  %v928_v16 = vrot.slane %v919_v33, 7 }
 0x135   :  { %4158 = vst [vmem:[#allocation35_spill] sm:$0xff] %v3287_v63  ;;  %v584_v25 = vsel %vm85_vm4, %v568_v27, %v2780_v50  ;;  %v616_v0 = vsel %vm86_vm5, %v2780_v50, %v568_v27  ;;  %v943_v62 = vsel %vm135_vm0, %v927_v14, %v935_v49  ;;  %v983_v32 = vsel %vm168_vm2, %v967_v53, %v959_v44 }
 0x136   :  { %4159 = vst [vmem:[#allocation44_spill] sm:$0xff] %v3291_v5  ;;  %v600_v47 = vadd.f32 %v584_v25, %v4160_v39  ;;  %v1014_v5 = vadd.f32 %v943_v62, %v918_v36  ;;  %v951_v63 = vsel %vm135_vm0, %v935_v49, %v927_v14  ;;  %v975_v31 = vsel %vm168_vm2, %v959_v44, %v967_v53 }
 0x137   :  { %v1030_v25 = vsel %vm84_vm1, %v943_v62, %v983_v32  ;;  %v997_v50 = vsel %vm81_vm3, %v975_v31, %v951_v63  ;;  %v936_v27 = vrot.slane %v920_v51, 7  ;;  %v960_v36 = vrot.slane %v919_v33, 1 }
 0x138   :  { %v632_v34 = vadd.f32 %v616_v0, %v600_v47  ;;  %v3314_v39 = vpop.permute.xlu2 %803  ;;  %v3316_v45 = vadd.f32 %v1030_v25, %v1014_v5  ;;  %v1013_v11 = vadd.f32 %v997_v50, %v917_v21  ;;  %v968_v35 = vrot.slane %v920_v51, 1  ;;  %v784_v22 = vpop.permute.xlu1 %783 }
 0x139   :  { %v952_v49 = vsel %vm135_vm0, %v936_v27, %v928_v16  ;;  %v944_v53 = vsel %vm135_vm0, %v928_v16, %v936_v27 }
 0x13a   :  { %v3319_v14 = vmul.f32 %v632_v34, %v2752_v40  ;;  %v1304_v44 = vmul.f32 %v632_v34, %v632_v34  ;;  %1075 = vrot.lane.b32.xlu1 %v3316_v45, %s1771_s0  ;;  %v3327_v63 = vadd.f32 %v1013_v11, %v975_v31  ;;  %v976_v21 = vsel %vm168_vm2, %v960_v36, %v968_v35 }
 0x13b   :  { %v984_v5 = vsel %vm168_vm2, %v968_v35, %v960_v36  ;;  %v999_v34 = vsel %vm81_vm3, %v976_v21, %v952_v49  ;;  %v1016_v62 = vadd.f32 %v944_v53, %v920_v51 }
 0x13c   :  { %4161 = vst [vmem:[#allocation50_spill] sm:$0xff] %v3319_v14  ;;  %v3333_v40 = vadd.f32 %v1304_v44, %v1288_v12  ;;  %v782_v47 = vpop.permute.xlu0 %781  ;;  %1073 = vrot.lane.b32.xlu0 %v3327_v63, %s1771_s0  ;;  %v1015_v0 = vadd.f32 %v999_v34, %v919_v33  ;;  %v1032_v11 = vsel %vm84_vm1, %v944_v53, %v984_v5  ;;  %v4166_v33 = vld [vmem:[#allocation51_spill] sm:$0xff] }
 0x13d   :  { %4162 = vst [vmem:[#allocation34_spill] sm:$0xff] %v3327_v63  ;;  %v3345_v35 = vadd.f32 %v1032_v11, %v1016_v62  ;;  %v4167_v44 = vld [vmem:[#allocation15_spill] sm:$0xff]  ;;  %v4168_v62 = vld [vmem:[#allocation20_spill] sm:$0xff] }
 0x13e   :  { %4163 = vst [vmem:[#allocation39_spill] sm:$0xff] %v3333_v40  ;;  %v3341_v16 = vadd.f32 %v1015_v0, %v976_v21 }
 0x13f   :  { %4165 = vst [vmem:[#allocation14_spill] sm:$0xff] %v3345_v35 }
 0x140   :  { %4164 = vst [vmem:[#allocation47_spill] sm:$0xff] %v3341_v16  ;;  %v810_v32 = vpop.permute.xlu2 %809  ;;  %1077 = vrot.lane.b32.xlu2 %v3341_v16, %s1771_s0  ;;  %v790_v12 = vpop.permute.xlu1 %789 }
 0x141   :  { %v841_v1 = vsel %vm85_vm4, %v810_v32, %v778_v6  ;;  %v873_v31 = vsel %vm86_vm5, %v778_v6, %v810_v32 }
 0x142   :  { %v857_v51 = vadd.f32 %v841_v1, %v4166_v33  ;;  %1081 = vrot.lane.b32.xlu1 %v3009_v4, %s1772_s1 }
 0x144   :  { %v788_v2 = vpop.permute.xlu0 %787  ;;  %v3354_v25 = vadd.f32 %v873_v31, %v857_v51  ;;  %1079 = vrot.lane.b32.xlu0 %v3345_v35, %s1771_s0 }
 0x148   :  { %v816_v50 = vpop.permute.xlu2 %815  ;;  %1083 = vrot.lane.b32.xlu2 %v2974_v46, %s1772_s1  ;;  %v796_v27 = vpop.permute.xlu1 %795 }
 0x149   :  { %v844_v36 = vsel %vm85_vm4, %v816_v50, %v784_v22  ;;  %v876_v6 = vsel %vm86_vm5, %v784_v22, %v816_v50 }
 0x14a   :  { %v860_v49 = vadd.f32 %v844_v36, %v4167_v44  ;;  %1087 = vrot.lane.b32.xlu1 %v3153_v48, %s1772_s1 }
 0x14c   :  { %v794_v53 = vpop.permute.xlu0 %793  ;;  %v3367_v21 = vadd.f32 %v876_v6, %v860_v49  ;;  %1085 = vrot.lane.b32.xlu0 %v3011_v38, %s1772_s1 }
 0x150   :  { %v822_v5 = vpop.permute.xlu2 %821  ;;  %1089 = vrot.lane.b32.xlu2 %v3049_v55, %s1772_s1  ;;  %v802_v34 = vpop.permute.xlu1 %801 }
 0x151   :  { %v847_v0 = vsel %vm85_vm4, %v822_v5, %v790_v12  ;;  %v879_v22 = vsel %vm86_vm5, %v790_v12, %v822_v5 }
 0x152   :  { %v863_v11 = vadd.f32 %v847_v0, %v4168_v62  ;;  %1093 = vrot.lane.b32.xlu1 %v3213_v20, %s1772_s1 }
 0x154   :  { %v800_v32 = vpop.permute.xlu0 %799  ;;  %v3380_v1 = vadd.f32 %v879_v22, %v863_v11  ;;  %1091 = vrot.lane.b32.xlu0 %v3072_v28, %s1772_s1  ;;  %v4171_v22 = vld [vmem:[#allocation27_spill] sm:$0xff]  ;;  %v4172_v11 = vld [vmem:[#allocation13_spill] sm:$0xff] }
 0x156   :  { %4169 = vst [vmem:[#allocation42_spill] sm:$0xff] %v3380_v1 }
 0x158   :  { %v828_v31 = vpop.permute.xlu2 %827  ;;  %1095 = vrot.lane.b32.xlu2 %v3179_v52, %s1772_s1  ;;  %v808_v33 = vpop.permute.xlu1 %807 }
 0x159   :  { %v850_v51 = vsel %vm85_vm4, %v828_v31, %v796_v27  ;;  %v882_v12 = vsel %vm86_vm5, %v796_v27, %v828_v31 }
 0x15a   :  { %v866_v50 = vadd.f32 %v850_v51, %v2694_v54  ;;  %1099 = vrot.lane.b32.xlu1 %v3269_v61, %s1772_s1  ;;  %v4201_v61 = vld [vmem:[#allocation25_spill] sm:$0xff] }
 0x15b   :  { %v3535_v28 = vadd.f32 0.0081, %v4201_v61 }
 0x15c   :  { %v806_v36 = vpop.permute.xlu0 %805  ;;  %v3393_v6 = vadd.f32 %v882_v12, %v866_v50  ;;  %1097 = vrot.lane.b32.xlu0 %v3196_v59, %s1772_s1  ;;  %v3529_v59 = vadd.f32 %v3061_v57, %v3061_v57  ;;  %v1386_v57 = vadd.f32 0.0081, %v3054_v26 }
 0x15e   :  { %4170 = vst [vmem:[#allocation45_spill] sm:$0xff] %v3393_v6 }
 0x160   :  { %v834_v44 = vpop.permute.xlu2 %833  ;;  %1101 = vrot.lane.b32.xlu2 %v3252_v56, %s1772_s1  ;;  %v814_v49 = vpop.permute.xlu1 %813 }
 0x161   :  { %v853_v5 = vsel %vm85_vm4, %v834_v44, %v802_v34  ;;  %v885_v54 = vsel %vm86_vm5, %v802_v34, %v834_v44  ;;  %v843_v27 = vsel %vm85_vm4, %v814_v49, %v782_v47  ;;  %v875_v0 = vsel %vm86_vm5, %v782_v47, %v814_v49 }
 0x162   :  { %v869_v62 = vadd.f32 %v853_v5, %v4171_v22  ;;  %1105 = vrot.lane.b32.xlu1 %v3327_v63, %s1772_s1  ;;  %v859_v31 = vadd.f32 %v843_v27, %v4172_v11 }
 0x164   :  { %v3411_v51 = vpop.permute.xlu0 %811  ;;  %v3413_v12 = vadd.f32 %v885_v54, %v869_v62  ;;  %1103 = vrot.lane.b32.xlu0 %v3276_v3, %s1772_s1  ;;  %v3417_v34 = vadd.f32 %v875_v0, %v859_v31  ;;  %v4174_v0 = vld [vmem:[#allocation21_spill] sm:$0xff]  ;;  %v3502_v3 = vadd.f32 %v3043_v42, %v3043_v42  ;;  %v4197_v42 = vld [vmem:[#allocation18_spill] sm:$0xff] }
 0x165   :  { %v3522_v63 = vadd.f32 0.0081, %v4197_v42  ;;  %v3608_v42 = vadd.f32 %v3234_v29, %v3234_v29 }
 0x166   :  { %4173 = vst [vmem:[#allocation51_spill] sm:$0xff] %v3413_v12  ;;  %v4194_v12 = vld [vmem:[#allocation11_spill] sm:$0xff] }
 0x167   :  { %4198 = vst [vmem:[#allocation60_spill] sm:$0xff] %v3522_v63  ;;  %v3542_v63 = vadd.f32 %v3101_v37, %v3101_v37  ;;  %v3559_v37 = vadd.f32 %v3123_v41, %v3123_v41 }
 0x168   :  { %v840_v50 = vpop.permute.xlu2 %839  ;;  %1107 = vrot.lane.b32.xlu2 %v3316_v45, %s1772_s1  ;;  %v820_v47 = vpop.permute.xlu1 %819 }
 0x169   :  { %v856_v44 = vsel %vm85_vm4, %v840_v50, %v808_v33  ;;  %v888_v49 = vsel %vm86_vm5, %v808_v33, %v840_v50  ;;  %v846_v5 = vsel %vm85_vm4, %v820_v47, %v788_v2  ;;  %v878_v54 = vsel %vm86_vm5, %v788_v2, %v820_v47  ;;  %v4177_v50 = vld [vmem:[#allocation17_spill] sm:$0xff] }
 0x16a   :  { %v872_v27 = vadd.f32 %v856_v44, %v2770_v10  ;;  %1111 = vrot.lane.b32.xlu1 %v3345_v35, %s1772_s1  ;;  %v862_v22 = vadd.f32 %v846_v5, %v4174_v0 }
 0x16c   :  { %v3433_v62 = vpop.permute.xlu0 %817  ;;  %v3435_v11 = vadd.f32 %v888_v49, %v872_v27  ;;  %1109 = vrot.lane.b32.xlu0 %v3341_v16, %s1772_s1  ;;  %v3439_v33 = vadd.f32 %v878_v54, %v862_v22  ;;  %v4179_v22 = vld [vmem:[#allocation53_spill] sm:$0xff] }
 0x16e   :  { %4175 = vst [vmem:[#allocation15_spill] sm:$0xff] %v3435_v11 }
 0x16f   :  { %4176 = vst [vmem:[#allocation20_spill] sm:$0xff] %v3439_v33 }
 0x170   :  { %v3446_v44 = vpop.permute.xlu2 %1053 }
 0x171   :  { %v826_v31 = vpop.permute.xlu1 %825 }
 0x172   :  { %v849_v2 = vsel %vm85_vm4, %v826_v31, %v794_v53  ;;  %v881_v10 = vsel %vm86_vm5, %v794_v53, %v826_v31 }
 0x173   :  { %v865_v47 = vadd.f32 %v849_v2, %v4177_v50 }
 0x174   :  { %v3448_v5 = vpop.permute.xlu0 %823 }
 0x175   :  { %v3450_v49 = vadd.f32 %v881_v10, %v865_v47 }
 0x177   :  { %4178 = vst [vmem:[#allocation27_spill] sm:$0xff] %v3450_v49 }
 0x178   :  { %v3461_v31 = vpop.permute.xlu2 %1059 }
 0x179   :  { %v832_v27 = vpop.permute.xlu1 %831  ;;  %4181 = vst [vmem:[#allocation21_spill] sm:$0xff] %v3461_v31 }
 0x17a   :  { %v852_v54 = vsel %vm85_vm4, %v832_v27, %v800_v32  ;;  %v884_v0 = vsel %vm86_vm5, %v800_v32, %v832_v27 }
 0x17b   :  { %v868_v40 = vadd.f32 %v852_v54, %v4179_v22 }
 0x17c   :  { %v3457_v11 = vpop.permute.xlu0 %829 }
 0x17d   :  { %v3459_v53 = vadd.f32 %v884_v0, %v868_v40 }
 0x17f   :  { %4180 = vst [vmem:[#allocation13_spill] sm:$0xff] %v3459_v53 }
 0x180   :  { %v3472_v27 = vpop.permute.xlu2 %1065 }
 0x181   :  { %v838_v2 = vpop.permute.xlu1 %837  ;;  %4183 = vst [vmem:[#allocation53_spill] sm:$0xff] %v3472_v27 }
 0x182   :  { %v855_v10 = vsel %vm85_vm4, %v838_v2, %v806_v36  ;;  %v887_v50 = vsel %vm86_vm5, %v806_v36, %v838_v2  ;;  %v4187_v2 = vld [vmem:[#allocation33_spill] sm:$0xff] }
 0x183   :  { %v871_v47 = vadd.f32 %v855_v10, %v2774_v8  ;;  %v3490_v10 = vadd.f32 %v4187_v2, %v4187_v2  ;;  %v3510_v2 = vadd.f32 %v3045_v24, %v3045_v24  ;;  %v4200_v24 = vld [vmem:[#allocation52_spill] sm:$0xff] }
 0x184   :  { %v3468_v16 = vpop.permute.xlu0 %835  ;;  %4202 = vst [vmem:[#allocation52_spill] sm:$0xff] %v3535_v28 }
 0x185   :  { %v3470_v32 = vadd.f32 %v887_v50, %v871_v47  ;;  %v4188_v50 = vld [vmem:[#allocation41_spill] sm:$0xff] }
 0x186   :  { %v3494_v47 = vadd.f32 %v4188_v50, %v4188_v50  ;;  %v3513_v50 = vadd.f32 0.0081, %v3490_v10 }
 0x187   :  { %4182 = vst [vmem:[#allocation17_spill] sm:$0xff] %v3470_v32  ;;  %v4190_v32 = vld [vmem:[#allocation23_spill] sm:$0xff] }
 0x188   :  { %4189 = vst [vmem:[#allocation33_spill] sm:$0xff] %v3494_v47  ;;  %v3498_v14 = vadd.f32 %v4190_v32, %v4190_v32  ;;  %v3519_v32 = vadd.f32 0.0081, %v3494_v47  ;;  %v3578_v47 = vadd.f32 0.0081, %v3078_v60 }
 0x189   :  { %v1052_v54 = vpop.permute.xlu1 %1051  ;;  %4192 = vst [vmem:[#allocation23_spill] sm:$0xff] %v3510_v2 }
 0x18a   :  { %v3476_v0 = vpop.permute.xlu2 %1071  ;;  %4191 = vst [vmem:[#allocation41_spill] sm:$0xff] %v3498_v14  ;;  %v3525_v49 = vadd.f32 0.0081, %v3498_v14  ;;  %v3563_v14 = vadd.f32 %v3173_v19, %v3173_v19  ;;  %v3581_v19 = vadd.f32 0.0081, %v3542_v63 }
 0x18b   :  { %4184 = vst [vmem:[#allocation54_spill] sm:$0xff] %v3476_v0  ;;  %v3516_v0 = vadd.f32 0.0081, %v4194_v12 }
 0x18c   :  { %v3474_v40 = vpop.permute.xlu0 %1049  ;;  %4193 = vst [vmem:[#allocation57_spill] sm:$0xff] %v3513_v50  ;;  %v3625_v50 = vadd.f32 0.0081, %v3198_v9 }
 0x18d   :  { %4195 = vst [vmem:[#allocation58_spill] sm:$0xff] %v3516_v0  ;;  %v3619_v0 = vadd.f32 %v3239_v13, %v3239_v13  ;;  %v4215_v13 = vld [vmem:[#allocation49_spill] sm:$0xff] }
 0x18e   :  { %4196 = vst [vmem:[#allocation59_spill] sm:$0xff] %v3519_v32  ;;  %v3538_v32 = vadd.f32 0.0081, %v3502_v3 }
 0x18f   :  { %4199 = vst [vmem:[#allocation61_spill] sm:$0xff] %v3525_v49  ;;  %v3656_v12 = vadd.f32 0.0081, %v3619_v0 }
 0x190   :  { %4214 = vst [vmem:[#allocation67_spill] sm:$0xff] %v3625_v50  ;;  %v877_v50 = vsel %vm86_vm5, %v3175_v58, %v3433_v62 }
 0x192   :  { %v3478_v22 = vpop.permute.xlu1 %1057 }
 0x194   :  { %v3480_v35 = vpop.permute.xlu0 %1055 }
 0x19a   :  { %v3482_v53 = vpop.permute.xlu1 %1063  ;;  %v3484_v36 = vpop.permute.xlu2 %1077 }
 0x19b   :  { %4185 = vst [vmem:[#allocation55_spill] sm:$0xff] %v3484_v36  ;;  %v842_v36 = vsel %vm85_vm4, %v3411_v51, %v3108_v23 }
 0x19c   :  { %v3486_v8 = vpop.permute.xlu0 %1061  ;;  %v858_v6 = vadd.f32 %v842_v36, %v4200_v24  ;;  %v3548_v36 = vadd.f32 0.0081, %v3510_v2  ;;  %v3552_v24 = vadd.f32 %v3119_v7, %v3119_v7 }
 0x19d   :  { %4186 = vst [vmem:[#allocation56_spill] sm:$0xff] %v3486_v8 }
 0x19e   :  { %4203 = vst [vmem:[#allocation62_spill] sm:$0xff] %v3548_v36  ;;  %v874_v36 = vsel %vm86_vm5, %v3108_v23, %v3411_v51  ;;  %v3585_v23 = vadd.f32 %v3185_v30, %v3185_v30  ;;  %v845_v51 = vsel %vm85_vm4, %v3433_v62, %v3175_v58  ;;  %v3604_v30 = vadd.f32 0.0081, %v3563_v14  ;;  %v4219_v58 = vld [vmem:[#allocation30_spill] sm:$0xff] }
 0x19f   :  { %4204 = vst [vmem:[#allocation63_spill] sm:$0xff] %v3552_v24  ;;  %v890_v41 = vadd.f32 %v874_v36, %v858_v6  ;;  %v4221_v62 = vld [vmem:[#allocation22_spill] sm:$0xff] }
 0x1a0   :  { %4207 = vst [vmem:[#allocation66_spill] sm:$0xff] %v3585_v23 }
 0x1a2   :  { %v1084_v27 = vpop.permute.xlu2 %1083  ;;  %v3532_v33 = vpop.permute.xlu1 %1069 }
 0x1a3   :  { %v1114_v49 = vsel %vm85_vm4, %v1084_v27, %v1052_v54  ;;  %v1146_v7 = vsel %vm86_vm5, %v1052_v54, %v1084_v27  ;;  %v4208_v27 = vld [vmem:[#allocation43_spill] sm:$0xff] }
 0x1a4   :  { %v1130_v28 = vadd.f32 %v1114_v49, %v2974_v46  ;;  %v3555_v61 = vpop.permute.xlu0 %1067  ;;  %v3572_v46 = vadd.f32 0.0081, %v3056_v18  ;;  %v3575_v49 = vadd.f32 0.0081, %v3529_v59  ;;  %v3592_v54 = vadd.f32 0.0081, %v4208_v27 }
 0x1a5   :  { %4205 = vst [vmem:[#allocation64_spill] sm:$0xff] %v3555_v61  ;;  %v4211_v61 = vld [vmem:[#allocation19_spill] sm:$0xff] }
 0x1a6   :  { %4206 = vst [vmem:[#allocation65_spill] sm:$0xff] %v3572_v46  ;;  %v1162_v2 = vadd.f32 %v1146_v7, %v1130_v28  ;;  %v3595_v28 = vadd.f32 0.0081, %v3552_v24  ;;  %v3598_v7 = vadd.f32 0.0081, %v3559_v37  ;;  %v4210_v46 = vld [vmem:[#allocation29_spill] sm:$0xff]  ;;  %v861_v1 = vadd.f32 %v845_v51, %v4211_v61 }
 0x1a7   :  { %v3601_v18 = vadd.f32 0.0081, %v4210_v46  ;;  %4213 = vst [vmem:[#allocation19_spill] sm:$0xff] %v3619_v0  ;;  %v848_v61 = vsel %vm85_vm4, %v3448_v5, %v3226_v15 }
 0x1a8   :  { %4209 = vst [vmem:[#allocation43_spill] sm:$0xff] %v3595_v28  ;;  %v1178_v6 = vadd.f32 %v1162_v2, %v890_v41  ;;  %v1210_v36 = vsub.f32 %v890_v41, %v1162_v2  ;;  %v3612_v2 = vadd.f32 0.0081, %v3182_v43  ;;  %v3615_v41 = vadd.f32 0.0081, %v3585_v23 }
 0x1aa   :  { %v1194_v31 = vmul.f32 4.5, %v1178_v6  ;;  %v1226_v24 = vmul.f32 4.5, %v1210_v36  ;;  %v1090_v28 = vpop.permute.xlu2 %1089  ;;  %4212 = vst [vmem:[#allocation29_spill] sm:$0xff] %v3615_v41  ;;  %v3637_v41 = vadd.f32 %v4215_v13, %v4215_v13  ;;  %v4217_v13 = vld [vmem:[#allocation46_spill] sm:$0xff] }
 0x1ab   :  { %v1117_v29 = vsel %vm85_vm4, %v1090_v28, %v3478_v22  ;;  %v1149_v9 = vsel %vm86_vm5, %v3478_v22, %v1090_v28  ;;  %v3653_v8 = vadd.f32 0.0081, %v4217_v13  ;;  %4218 = vst [vmem:[#allocation46_spill] sm:$0xff] %v3656_v12  ;;  %v4222_v22 = vld [vmem:[#allocation40_spill] sm:$0xff]  ;;  %v880_v12 = vsel %vm86_vm5, %v3226_v15, %v3448_v5 }
 0x1ac   :  { %v1402_v51 = vsub.f32 %v1194_v31, %v3054_v26  ;;  %v1133_v6 = vadd.f32 %v1117_v29, %v3049_v55  ;;  %v3633_v36 = vpop.permute.xlu1 %1075  ;;  %v1338_v23 = vsub.f32 %v1226_v24, %v3502_v3  ;;  %v3648_v26 = vadd.f32 0.0081, %v3608_v42 }
 0x1ad   :  { %v893_v55 = vadd.f32 %v877_v50, %v861_v1  ;;  %v3659_v3 = vadd.f32 0.0081, %v4219_v58  ;;  %v864_v24 = vadd.f32 %v848_v61, %v4221_v62  ;;  %v851_v1 = vsel %vm85_vm4, %v3457_v11, %v4222_v22  ;;  %v4227_v58 = vld [vmem:[#allocation16_spill] sm:$0xff] }
 0x1ae   :  { %v1418_v31 = vadd.f32 0.0729, %v1402_v51  ;;  %v1165_v29 = vadd.f32 %v1149_v9, %v1133_v6  ;;  %v3650_v20 = vpop.permute.xlu0 %1073  ;;  %v3667_v51 = vadd.f32 0.0081, %v3637_v41  ;;  %v4224_v6 = vld [vmem:[#allocation24_spill] sm:$0xff]  ;;  %v854_v62 = vsel %vm85_vm4, %v3468_v16, %v3314_v39 }
 0x1af   :  { %4216 = vst [vmem:[#allocation49_spill] sm:$0xff] %v3650_v20  ;;  %v3670_v20 = vadd.f32 0.0081, %v4224_v6  ;;  %v1354_v61 = vadd.f32 0.0729, %v1338_v23  ;;  %v896_v0 = vadd.f32 %v880_v12, %v864_v24  ;;  %v883_v5 = vsel %vm86_vm5, %v4222_v22, %v3457_v11 }
 0x1b0   :  { %4220 = vst [vmem:[#allocation68_spill] sm:$0xff] %v3659_v3  ;;  %v1434_v50 = vmul.f32 %v1418_v31, %v1386_v57  ;;  %v1181_v9 = vadd.f32 %v1165_v29, %v893_v55  ;;  %v1213_v28 = vsub.f32 %v893_v55, %v1165_v29  ;;  %v4226_v29 = vld [vmem:[#allocation35_spill] sm:$0xff] }
 0x1b1   :  { %4223 = vst [vmem:[#allocation22_spill] sm:$0xff] %v3667_v51  ;;  %v3682_v3 = vadd.f32 %v4226_v29, %v4226_v29  ;;  %v867_v51 = vadd.f32 %v851_v1, %v4227_v58  ;;  %v1370_v58 = vmul.f32 %v1354_v61, %v3538_v32 }
 0x1b2   :  { %4225 = vst [vmem:[#allocation40_spill] sm:$0xff] %v3670_v20  ;;  %1636 = vrcp.f32 %v1434_v50  ;;  %v1197_v57 = vmul.f32 4.5, %v1181_v9  ;;  %v1229_v55 = vmul.f32 4.5, %v1213_v28  ;;  %v1096_v31 = vpop.permute.xlu2 %1095  ;;  %v4228_v20 = vld [vmem:[#allocation26_spill] sm:$0xff] }
 0x1b3   :  { %v1120_v15 = vsel %vm85_vm4, %v1096_v31, %v3482_v53  ;;  %v870_v12 = vadd.f32 %v854_v62, %v4228_v20  ;;  %v1152_v24 = vsel %vm86_vm5, %v3482_v53, %v1096_v31  ;;  %v899_v32 = vadd.f32 %v883_v5, %v867_v51 }
 0x1b4   :  { %v1341_v23 = vsub.f32 %v1229_v55, %v3542_v63  ;;  %v1405_v9 = vsub.f32 %v1197_v57, %v4208_v27  ;;  %v1136_v28 = vadd.f32 %v1120_v15, %v3179_v52  ;;  %v1082_v29 = vpop.permute.xlu1 %1081  ;;  %v3705_v52 = vadd.f32 0.0081, %v3682_v3  ;;  %v4229_v57 = vld [vmem:[#allocation44_spill] sm:$0xff] }
 0x1b5   :  { %v1113_v1 = vsel %vm85_vm4, %v1082_v29, %v3474_v40  ;;  %v3708_v20 = vadd.f32 0.0081, %v4229_v57  ;;  %v886_v53 = vsel %vm86_vm5, %v3314_v39, %v3468_v16  ;;  %v1514_v51 = vmul.f32 0.5, %v1370_v58 }
 0x1b6   :  { %v1357_v11 = vadd.f32 0.0729, %v1341_v23  ;;  %v1421_v22 = vadd.f32 0.0729, %v1405_v9  ;;  %v1168_v63 = vadd.f32 %v1152_v24, %v1136_v28  ;;  %v1129_v27 = vadd.f32 %v1113_v1, %v3009_v4  ;;  %v3714_v61 = vpop.permute.xlu0 %1079 }
 0x1b7   :  { %v1145_v4 = vsel %vm86_vm5, %v3474_v40, %v1082_v29  ;;  %v3720_v23 = vadd.f32 %v886_v53, %v870_v12 }
 0x1b8   :  { %v1637_v62 = vpop.eup %1636  ;;  %v1437_v55 = vmul.f32 %v1421_v22, %v3592_v54  ;;  %v1184_v31 = vadd.f32 %v1168_v63, %v896_v0  ;;  %v1216_v15 = vsub.f32 %v896_v0, %v1168_v63  ;;  %v1161_v5 = vadd.f32 %v1145_v4, %v1129_v27 }
 0x1b9   :  { %v1466_v9 = vmul.f32 %v1637_v62, %v1434_v50  ;;  %v1373_v28 = vmul.f32 %v1357_v11, %v3581_v19 }
 0x1ba   :  { %1638 = vrcp.f32 %v1437_v55  ;;  %v1200_v39 = vmul.f32 4.5, %v1184_v31  ;;  %v1232_v16 = vmul.f32 4.5, %v1216_v15  ;;  %v1102_v24 = vpop.permute.xlu2 %1101  ;;  %v1177_v54 = vadd.f32 %v1161_v5, %v3354_v25 }
 0x1bb   :  { %v1482_v1 = vsub.f32 2.0, %v1466_v9  ;;  %v1209_v0 = vsub.f32 %v3354_v25, %v1161_v5  ;;  %v1123_v40 = vsel %vm85_vm4, %v1102_v24, %v3532_v33  ;;  %v1155_v19 = vsel %vm86_vm5, %v3532_v33, %v1102_v24 }
 0x1bc   :  { %v1344_v29 = vsub.f32 %v1232_v16, %v3563_v14  ;;  %v1408_v50 = vsub.f32 %v1200_v39, %v3182_v43  ;;  %v1139_v12 = vadd.f32 %v1123_v40, %v3252_v56  ;;  %v1088_v58 = vpop.permute.xlu1 %1087  ;;  %v1193_v22 = vmul.f32 4.5, %v1177_v54 }
 0x1bd   :  { %v1498_v11 = vmul.f32 %v1637_v62, %v1482_v1  ;;  %v1225_v63 = vmul.f32 4.5, %v1209_v0  ;;  %v1116_v25 = vsel %vm85_vm4, %v1088_v58, %v3480_v35  ;;  %v1517_v27 = vmul.f32 0.5, %v1373_v28 }
 0x1be   :  { %v1360_v53 = vadd.f32 0.0729, %v1344_v29  ;;  %v1424_v31 = vadd.f32 0.0729, %v1408_v50  ;;  %v1171_v14 = vadd.f32 %v1155_v19, %v1139_v12  ;;  %v1401_v56 = vsub.f32 %v1193_v22, %v3078_v60  ;;  %v1086_v54 = vpop.permute.xlu0 %1085 }
 0x1bf   :  { %v1530_v15 = vmul.f32 %v1514_v51, %v1498_v11  ;;  %v1337_v43 = vsub.f32 %v1225_v63, %v3529_v59  ;;  %v1132_v4 = vadd.f32 %v1116_v25, %v3153_v48  ;;  %v1148_v60 = vsel %vm86_vm5, %v3480_v35, %v1088_v58 }
 0x1c0   :  { %v1639_v33 = vpop.eup %1638  ;;  %v1376_v62 = vmul.f32 %v1360_v53, %v3604_v30  ;;  %v1440_v9 = vmul.f32 %v1424_v31, %v3612_v2  ;;  %v1187_v5 = vadd.f32 %v1171_v14, %v899_v32  ;;  %v1219_v39 = vsub.f32 %v899_v32, %v1171_v14 }
 0x1c1   :  { %v1546_v16 = vsub.f32 0.5, %v1530_v15  ;;  %v1469_v24 = vmul.f32 %v1639_v33, %v1437_v55  ;;  %v1353_v28 = vadd.f32 0.0729, %v1337_v43  ;;  %v1417_v1 = vadd.f32 0.0729, %v1401_v56 }
 0x1c2   :  { %1640 = vrcp.f32 %v1440_v9  ;;  %v1203_v51 = vmul.f32 4.5, %v1187_v5  ;;  %v1235_v0 = vmul.f32 4.5, %v1219_v39  ;;  %v1164_v40 = vadd.f32 %v1148_v60, %v1132_v4  ;;  %v1108_v50 = vpop.permute.xlu2 %1107 }
 0x1c3   :  { %v1562_v48 = vmax.f32 %v1546_v16, 0.0  ;;  %v1485_v59 = vsub.f32 2.0, %v1469_v24  ;;  %v1369_v30 = vmul.f32 %v1353_v28, %v3575_v49  ;;  %v1433_v2 = vmul.f32 %v1417_v1, %v3578_v47 }
 0x1c4   :  { %v1347_v32 = vsub.f32 %v1235_v0, %v3608_v42  ;;  %v1411_v55 = vsub.f32 %v1203_v51, %v4217_v13  ;;  %v1115_v29 = vsel %vm85_vm4, %v1086_v54, %v3446_v44  ;;  %v1520_v11 = vmul.f32 0.5, %v1376_v62  ;;  %v1094_v28 = vpop.permute.xlu1 %1093 }
 0x1c5   :  { %v1578_v12 = vmin.f32 %v1562_v48, 1.0  ;;  %v1501_v19 = vmul.f32 %v1639_v33, %v1485_v59  ;;  %1642 = vrcp.f32 %v1433_v2  ;;  %v1180_v49 = vadd.f32 %v1164_v40, %v3367_v21  ;;  %v4230_v59 = vld [vmem:[#allocation11_spill] sm:$0xff] }
 0x1c6   :  { %v1363_v35 = vadd.f32 0.0729, %v1347_v32  ;;  %v1427_v58 = vadd.f32 0.0729, %v1411_v55  ;;  %v1212_v47 = vsub.f32 %v3367_v21, %v1164_v40  ;;  %v1513_v22 = vmul.f32 0.5, %v1369_v30 }
 0x1c7   :  { %1594 = vst [vmem:[#allocation7 + $0x8] sm:$0xff] %v1578_v12  ;;  %v1533_v42 = vmul.f32 %v1517_v27, %v1501_v19  ;;  %v1131_v13 = vadd.f32 %v1115_v29, %v3011_v38  ;;  %v1126_v63 = vsel %vm85_vm4, %v1108_v50, %v3633_v36  ;;  %v1196_v31 = vmul.f32 4.5, %v1180_v49 }
 0x1c8   :  { %v1641_v25 = vpop.eup %1640  ;;  %v1443_v53 = vmul.f32 %v1427_v58, %v3653_v8  ;;  %v1228_v14 = vmul.f32 4.5, %v1212_v47  ;;  %v1147_v15 = vsel %vm86_vm5, %v3446_v44, %v1086_v54  ;;  %v1379_v27 = vmul.f32 %v1363_v35, %v3648_v26  ;;  %v4232_v35 = vld [vmem:[#allocation37_spill] sm:$0xff] }
 0x1c9   :  { %v1549_v43 = vsub.f32 0.5, %v1533_v42  ;;  %v1472_v21 = vmul.f32 %v1641_v25, %v1440_v9  ;;  %v1163_v56 = vadd.f32 %v1147_v15, %v1131_v13  ;;  %v1404_v4 = vsub.f32 %v1196_v31, %v4210_v46  ;;  %v4233_v42 = vld [vmem:[#allocation57_spill] sm:$0xff]  ;;  %v1092_v31 = vpop.permute.xlu0 %1091 }
 0x1ca   :  { %1644 = vrcp.f32 %v1443_v53  ;;  %v1340_v38 = vsub.f32 %v1228_v14, %v3559_v37  ;;  %v1142_v33 = vadd.f32 %v1126_v63, %v3316_v45  ;;  %v1158_v26 = vsel %vm86_vm5, %v3633_v36, %v1108_v50  ;;  %v4234_v63 = vld [vmem:[#allocation58_spill] sm:$0xff] }
 0x1cb   :  { %v1643_v62 = vpop.eup %1642  ;;  %v1565_v8 = vmax.f32 %v1549_v43, 0.0  ;;  %v1488_v5 = vsub.f32 2.0, %v1472_v21  ;;  %v1179_v39 = vadd.f32 %v1163_v56, %v3417_v34  ;;  %v1211_v16 = vsub.f32 %v3417_v34, %v1163_v56 }
 0x1cc   :  { %v1465_v44 = vmul.f32 %v1643_v62, %v1433_v2  ;;  %v1356_v24 = vadd.f32 0.0729, %v1340_v38  ;;  %v1420_v9 = vadd.f32 0.0729, %v1404_v4  ;;  %v1174_v60 = vadd.f32 %v1158_v26, %v1142_v33  ;;  %v4231_v2 = vld [vmem:[#allocation56_spill] sm:$0xff] }
 0x1cd   :  { %v1581_v37 = vmin.f32 %v1565_v8, 1.0  ;;  %v1504_v1 = vmul.f32 %v1641_v25, %v1488_v5  ;;  %v1195_v46 = vmul.f32 4.5, %v1179_v39  ;;  %v1227_v54 = vmul.f32 4.5, %v1211_v16  ;;  %v4235_v39 = vld [vmem:[#allocation21_spill] sm:$0xff]  ;;  %v1100_v16 = vpop.permute.xlu1 %1099 }
 0x1ce   :  { %v1481_v45 = vsub.f32 2.0, %v1465_v44  ;;  %v1372_v51 = vmul.f32 %v1356_v24, %v3598_v7  ;;  %v1436_v0 = vmul.f32 %v1420_v9, %v3601_v18  ;;  %v1119_v36 = vsel %vm85_vm4, %v1094_v28, %v4231_v2  ;;  %v4236_v9 = vld [vmem:[#allocation40_spill] sm:$0xff] }
 0x1cf   :  { %1597 = vst [vmem:[#allocation7 + $0x20] sm:$0xff] %v1581_v37  ;;  %v1536_v34 = vmul.f32 %v1520_v11, %v1504_v1  ;;  %v1339_v48 = vsub.f32 %v1227_v54, %v3490_v10  ;;  %v1403_v30 = vsub.f32 %v1195_v46, %v4230_v59  ;;  %v1523_v40 = vmul.f32 0.5, %v1379_v27  ;;  %v4238_v54 = vld [vmem:[#allocation32_spill] sm:$0xff] }
 0x1d0   :  { %v1645_v32 = vpop.eup %1644  ;;  %v1497_v55 = vmul.f32 %v1643_v62, %v1481_v45  ;;  %1646 = vrcp.f32 %v1436_v0  ;;  %v1190_v29 = vadd.f32 %v1174_v60, %v3720_v23  ;;  %v1222_v10 = vsub.f32 %v3720_v23, %v1174_v60  ;;  %v4239_v60 = vld [vmem:[#allocation64_spill] sm:$0xff] }
 0x1d1   :  { %v1552_v7 = vsub.f32 0.5, %v1536_v34  ;;  %v1475_v50 = vmul.f32 %v1645_v32, %v1443_v53  ;;  %v1355_v18 = vadd.f32 0.0729, %v1339_v48  ;;  %v1419_v12 = vadd.f32 0.0729, %v1403_v30 }
 0x1d2   :  { %v1529_v19 = vmul.f32 %v1513_v22, %v1497_v55  ;;  %v1206_v11 = vmul.f32 4.5, %v1190_v29  ;;  %v1135_v58 = vadd.f32 %v1119_v36, %v4232_v35  ;;  %v1516_v15 = vmul.f32 0.5, %v1372_v51  ;;  %v4240_v55 = vld [vmem:[#allocation22_spill] sm:$0xff]  ;;  %v4241_v29 = vld [vmem:[#allocation36_spill] sm:$0xff] }
 0x1d3   :  { %v1568_v49 = vmax.f32 %v1552_v7, 0.0  ;;  %v1491_v47 = vsub.f32 2.0, %v1475_v50  ;;  %v1371_v13 = vmul.f32 %v1355_v18, %v4233_v42  ;;  %v1435_v25 = vmul.f32 %v1419_v12, %v4234_v63  ;;  %v4242_v50 = vld [vmem:[#allocation31_spill] sm:$0xff]  ;;  %v4244_v35 = vld [vmem:[#allocation20_spill] sm:$0xff] }
 0x1d4   :  { %v1545_v14 = vsub.f32 0.5, %v1529_v19  ;;  %v1238_v43 = vmul.f32 4.5, %v1222_v10  ;;  %v1414_v53 = vsub.f32 %v1206_v11, %v4224_v6  ;;  %v1151_v23 = vsel %vm86_vm5, %v4231_v2, %v1094_v28  ;;  %v4237_v28 = vld [vmem:[#allocation42_spill] sm:$0xff] }
 0x1d5   :  { %v1584_v21 = vmin.f32 %v1568_v49, 1.0  ;;  %v1507_v27 = vmul.f32 %v1645_v32, %v1491_v47  ;;  %1648 = vrcp.f32 %v1435_v25  ;;  %v1167_v33 = vadd.f32 %v1151_v23, %v1135_v58  ;;  %v4243_v11 = vld [vmem:[#allocation66_spill] sm:$0xff]  ;;  %v1098_v49 = vpop.permute.xlu0 %1097 }
 0x1d6   :  { %v1647_v22 = vpop.eup %1646  ;;  %v1561_v56 = vmax.f32 %v1545_v14, 0.0  ;;  %v1350_v38 = vsub.f32 %v1238_v43, %v3637_v41  ;;  %v1430_v4 = vadd.f32 0.0729, %v1414_v53  ;;  %v1515_v5 = vmul.f32 0.5, %v1371_v13 }
 0x1d7   :  { %1600 = vst [vmem:[#allocation7 + $0x38] sm:$0xff] %v1584_v21  ;;  %v1539_v62 = vmul.f32 %v1523_v40, %v1507_v27  ;;  %v1468_v8 = vmul.f32 %v1647_v22, %v1436_v0  ;;  %v1118_v6 = vsel %vm85_vm4, %v1092_v31, %v4235_v39  ;;  %v1183_v37 = vadd.f32 %v1167_v33, %v4237_v28  ;;  %v4245_v21 = vld [vmem:[#allocation67_spill] sm:$0xff] }
 0x1d8   :  { %v1577_v44 = vmin.f32 %v1561_v56, 1.0  ;;  %v1366_v24 = vadd.f32 0.0729, %v1350_v38  ;;  %v1446_v26 = vmul.f32 %v1430_v4, %v4236_v9  ;;  %v1215_v41 = vsub.f32 %v4237_v28, %v1167_v33  ;;  %v4247_v33 = vld [vmem:[#allocation29_spill] sm:$0xff] }
 0x1d9   :  { %v1555_v1 = vsub.f32 0.5, %v1539_v62  ;;  %v1484_v46 = vsub.f32 2.0, %v1468_v8  ;;  %v1134_v45 = vadd.f32 %v1118_v6, %v4238_v54  ;;  %v1199_v51 = vmul.f32 4.5, %v1183_v37  ;;  %v4248_v8 = vld [vmem:[#allocation18_spill] sm:$0xff] }
 0x1da   :  { %1593 = vst [vmem:[#allocation7] sm:$0xff] %v1577_v44  ;;  %1650 = vrcp.f32 %v1446_v26  ;;  %v1150_v0 = vsel %vm86_vm5, %v4235_v39, %v1092_v31  ;;  %v1122_v34 = vsel %vm85_vm4, %v1100_v16, %v4239_v60  ;;  %v1231_v2 = vmul.f32 4.5, %v1215_v41 }
 0x1db   :  { %v1649_v48 = vpop.eup %1648  ;;  %v1571_v59 = vmax.f32 %v1555_v1, 0.0  ;;  %v1500_v30 = vmul.f32 %v1647_v22, %v1484_v46  ;;  %v1166_v36 = vadd.f32 %v1150_v0, %v1134_v45  ;;  %v1382_v40 = vmul.f32 %v1366_v24, %v4240_v55  ;;  %v4246_v22 = vld [vmem:[#allocation53_spill] sm:$0xff]  ;;  %v4254_v55 = vld [vmem:[#allocation30_spill] sm:$0xff] }
 0x1dc   :  { %v1467_v32 = vmul.f32 %v1649_v48, %v1435_v25  ;;  %v1407_v7 = vsub.f32 %v1199_v51, %v4241_v29  ;;  %v1138_v18 = vadd.f32 %v1122_v34, %v4242_v50  ;;  %v1343_v10 = vsub.f32 %v1231_v2, %v4243_v11  ;;  %v4250_v24 = vld [vmem:[#allocation45_spill] sm:$0xff]  ;;  %v4253_v2 = vld [vmem:[#allocation59_spill] sm:$0xff] }
 0x1dd   :  { %v1587_v12 = vmin.f32 %v1571_v59, 1.0  ;;  %v1532_v19 = vmul.f32 %v1516_v15, %v1500_v30  ;;  %v1182_v58 = vadd.f32 %v1166_v36, %v4244_v35  ;;  %v1214_v13 = vsub.f32 %v4244_v35, %v1166_v36  ;;  %v4255_v50 = vld [vmem:[#allocation49_spill] sm:$0xff] }
 0x1de   :  { %v1483_v47 = vsub.f32 2.0, %v1467_v32  ;;  %v1423_v42 = vadd.f32 0.0729, %v1407_v7  ;;  %v1154_v63 = vsel %vm86_vm5, %v4239_v60, %v1100_v16  ;;  %v1359_v31 = vadd.f32 0.0729, %v1343_v10  ;;  %v4249_v16 = vld [vmem:[#allocation33_spill] sm:$0xff] }
 0x1df   :  { %1603 = vst [vmem:[#allocation7 + $0x50] sm:$0xff] %v1587_v12  ;;  %v1548_v25 = vsub.f32 0.5, %v1532_v19  ;;  %v1198_v14 = vmul.f32 4.5, %v1182_v58  ;;  %v1170_v43 = vadd.f32 %v1154_v63, %v1138_v18  ;;  %v1230_v23 = vmul.f32 4.5, %v1214_v13  ;;  %v4251_v60 = vld [vmem:[#allocation60_spill] sm:$0xff]  ;;  %v4256_v10 = vld [vmem:[#allocation19_spill] sm:$0xff] }
 0x1e0   :  { %v1651_v53 = vpop.eup %1650  ;;  %v1499_v15 = vmul.f32 %v1649_v48, %v1483_v47  ;;  %v1439_v27 = vmul.f32 %v1423_v42, %v4245_v21  ;;  %v1121_v56 = vsel %vm85_vm4, %v1098_v49, %v4246_v22  ;;  %v1375_v62 = vmul.f32 %v1359_v31, %v4247_v33  ;;  %v4257_v42 = vld [vmem:[#allocation27_spill] sm:$0xff] }
 0x1e1   :  { %v1564_v38 = vmax.f32 %v1548_v25, 0.0  ;;  %v1478_v4 = vmul.f32 %v1651_v53, %v1446_v26  ;;  %v1406_v39 = vsub.f32 %v1198_v14, %v4248_v8  ;;  %v1342_v44 = vsub.f32 %v1230_v23, %v4249_v16  ;;  %v1106_v26 = vpop.permute.xlu1 %1105  ;;  %v1104_v25 = vpop.permute.xlu0 %1103  ;;  %v4258_v14 = vld [vmem:[#allocation68_spill] sm:$0xff] }
 0x1e2   :  { %v1531_v6 = vmul.f32 %v1515_v5, %v1499_v15  ;;  %1652 = vrcp.f32 %v1439_v27  ;;  %v1186_v9 = vadd.f32 %v1170_v43, %v4250_v24  ;;  %v1526_v1 = vmul.f32 0.5, %v1382_v40  ;;  %v4252_v5 = vld [vmem:[#allocation38_spill] sm:$0xff] }
 0x1e3   :  { %v1580_v28 = vmin.f32 %v1564_v38, 1.0  ;;  %v1494_v37 = vsub.f32 2.0, %v1478_v4  ;;  %v1422_v46 = vadd.f32 0.0729, %v1406_v39  ;;  %v1358_v54 = vadd.f32 0.0729, %v1342_v44 }
 0x1e4   :  { %v1547_v41 = vsub.f32 0.5, %v1531_v6  ;;  %v1202_v45 = vmul.f32 4.5, %v1186_v9  ;;  %v1218_v51 = vsub.f32 %v4250_v24, %v1170_v43  ;;  %v1137_v48 = vadd.f32 %v1121_v56, %v4252_v5  ;;  %v4262_v44 = vld [vmem:[#allocation41_spill] sm:$0xff] }
 0x1e5   :  { %1596 = vst [vmem:[#allocation7 + $0x18] sm:$0xff] %v1580_v28  ;;  %v1510_v0 = vmul.f32 %v1651_v53, %v1494_v37  ;;  %v1438_v34 = vmul.f32 %v1422_v46, %v4251_v60  ;;  %v1153_v59 = vsel %vm86_vm5, %v4246_v22, %v1098_v49  ;;  %v1374_v36 = vmul.f32 %v1358_v54, %v4253_v2  ;;  %v4259_v53 = vld [vmem:[#allocation34_spill] sm:$0xff]  ;;  %v4263_v9 = vld [vmem:[#allocation25_spill] sm:$0xff]  ;;  %v4264_v46 = vld [vmem:[#allocation51_spill] sm:$0xff] }
 0x1e6   :  { %v1563_v30 = vmax.f32 %v1547_v41, 0.0  ;;  %v1234_v32 = vmul.f32 4.5, %v1218_v51  ;;  %v1410_v40 = vsub.f32 %v1202_v45, %v4254_v55  ;;  %v1169_v7 = vadd.f32 %v1153_v59, %v1137_v48  ;;  %v4267_v55 = vld [vmem:[#allocation52_spill] sm:$0xff] }
 0x1e7   :  { %v1542_v29 = vmul.f32 %v1526_v1, %v1510_v0  ;;  %1654 = vrcp.f32 %v1438_v34  ;;  %v1125_v18 = vsel %vm85_vm4, %v1106_v26, %v4255_v50  ;;  %v1519_v11 = vmul.f32 0.5, %v1375_v62  ;;  %v4261_v62 = vld [vmem:[#allocation54_spill] sm:$0xff]  ;;  %v4265_v0 = vld [vmem:[#allocation12_spill] sm:$0xff] }
 0x1e8   :  { %v1653_v12 = vpop.eup %1652  ;;  %v1579_v19 = vmin.f32 %v1563_v30, 1.0  ;;  %v1346_v35 = vsub.f32 %v1234_v32, %v4256_v10  ;;  %v1426_v58 = vadd.f32 0.0729, %v1410_v40  ;;  %v1185_v13 = vadd.f32 %v1169_v7, %v4257_v42 }
 0x1e9   :  { %v1558_v49 = vsub.f32 0.5, %v1542_v29  ;;  %v1471_v47 = vmul.f32 %v1653_v12, %v1439_v27  ;;  %v1217_v63 = vsub.f32 %v4257_v42, %v1169_v7  ;;  %v1141_v15 = vadd.f32 %v1125_v18, %v4259_v53  ;;  %v4260_v27 = vld [vmem:[#allocation46_spill] sm:$0xff]  ;;  %v1112_v5 = vpop.permute.xlu1 %1111 }
 0x1ea   :  { %1595 = vst [vmem:[#allocation7 + $0x10] sm:$0xff] %v1579_v19  ;;  %v1362_v31 = vadd.f32 0.0729, %v1346_v35  ;;  %v1442_v43 = vmul.f32 %v1426_v58, %v4258_v14  ;;  %v1157_v21 = vsel %vm86_vm5, %v4255_v50, %v1106_v26  ;;  %v1201_v56 = vmul.f32 4.5, %v1185_v13  ;;  %v4269_v13 = vld [vmem:[#allocation13_spill] sm:$0xff]  ;;  %v4270_v14 = vld [vmem:[#allocation14_spill] sm:$0xff] }
 0x1eb   :  { %v1574_v23 = vmax.f32 %v1558_v49, 0.0  ;;  %v1487_v22 = vsub.f32 2.0, %v1471_v47  ;;  %v1233_v38 = vmul.f32 4.5, %v1217_v63  ;;  %v1173_v33 = vadd.f32 %v1157_v21, %v1141_v15 }
 0x1ec   :  { %v1378_v4 = vmul.f32 %v1362_v31, %v4260_v27  ;;  %1656 = vrcp.f32 %v1442_v43  ;;  %v1124_v8 = vsel %vm85_vm4, %v1104_v25, %v4261_v62  ;;  %v1409_v28 = vsub.f32 %v1201_v56, %v4263_v9  ;;  %v4271_v27 = vld [vmem:[#allocation55_spill] sm:$0xff] }
 0x1ed   :  { %v1655_v39 = vpop.eup %1654  ;;  %v1590_v6 = vmin.f32 %v1574_v23, 1.0  ;;  %v1503_v16 = vmul.f32 %v1653_v12, %v1487_v22  ;;  %v1345_v24 = vsub.f32 %v1233_v38, %v4262_v44  ;;  %v1518_v1 = vmul.f32 0.5, %v1374_v36  ;;  %v4266_v36 = vld [vmem:[#allocation61_spill] sm:$0xff]  ;;  %v4274_v9 = vld [vmem:[#allocation47_spill] sm:$0xff] }
 0x1ee   :  { %v1470_v37 = vmul.f32 %v1655_v39, %v1438_v34  ;;  %v1189_v41 = vadd.f32 %v1173_v33, %v4264_v46  ;;  %v1221_v54 = vsub.f32 %v4264_v46, %v1173_v33  ;;  %v1425_v26 = vadd.f32 0.0729, %v1409_v28 }
 0x1ef   :  { %1606 = vst [vmem:[#allocation7 + $0x68] sm:$0xff] %v1590_v6  ;;  %v1535_v45 = vmul.f32 %v1519_v11, %v1503_v16  ;;  %v1361_v51 = vadd.f32 0.0729, %v1345_v24  ;;  %v1140_v60 = vadd.f32 %v1124_v8, %v4265_v0  ;;  %v1156_v2 = vsel %vm86_vm5, %v4261_v62, %v1104_v25  ;;  %v4268_v11 = vld [vmem:[#allocation50_spill] sm:$0xff]  ;;  %v1110_v25 = vpop.permute.xlu0 %1109  ;;  %v4272_v8 = vld [vmem:[#allocation48_spill] sm:$0xff] }
 0x1f0   :  { %v1486_v48 = vsub.f32 2.0, %v1470_v37  ;;  %v1205_v59 = vmul.f32 4.5, %v1189_v41  ;;  %v1237_v30 = vmul.f32 4.5, %v1221_v54  ;;  %v1441_v40 = vmul.f32 %v1425_v26, %v4267_v55 }
 0x1f1   :  { %v1551_v34 = vsub.f32 0.5, %v1535_v45  ;;  %v1377_v32 = vmul.f32 %v1361_v51, %v4266_v36  ;;  %v1172_v29 = vadd.f32 %v1156_v2, %v1140_v60  ;;  %v1128_v19 = vsel %vm85_vm4, %v1112_v5, %v3714_v61  ;;  %v4275_v45 = vld [vmem:[#allocation15_spill] sm:$0xff]  ;;  %v4276_v60 = vld [vmem:[#allocation65_spill] sm:$0xff] }
 0x1f2   :  { %v1657_v7 = vpop.eup %1656  ;;  %v1502_v50 = vmul.f32 %v1655_v39, %v1486_v48  ;;  %v1349_v18 = vsub.f32 %v1237_v30, %v3682_v3  ;;  %v1413_v12 = vsub.f32 %v1205_v59, %v4229_v57  ;;  %v3858_v10 = vadd.f32 %v4268_v11, %v4268_v11  ;;  %v4277_v30 = vld [vmem:[#allocation62_spill] sm:$0xff]  ;;  %v4279_v11 = vld [vmem:[#allocation39_spill] sm:$0xff] }
 0x1f3   :  { %v1567_v35 = vmax.f32 %v1551_v34, 0.0  ;;  %v1474_v58 = vmul.f32 %v1657_v7, %v1442_v43  ;;  %1658 = vrcp.f32 %v1441_v40  ;;  %v1188_v63 = vadd.f32 %v1172_v29, %v4269_v13 }
 0x1f4   :  { %v1534_v49 = vmul.f32 %v1518_v1, %v1502_v50  ;;  %v1365_v47 = vadd.f32 0.0729, %v1349_v18  ;;  %v1429_v42 = vadd.f32 0.0729, %v1413_v12  ;;  %v1220_v57 = vsub.f32 %v4269_v13, %v1172_v29 }
 0x1f5   :  { %v1583_v3 = vmin.f32 %v1567_v35, 1.0  ;;  %v1490_v31 = vsub.f32 2.0, %v1474_v58  ;;  %v1144_v53 = vadd.f32 %v1128_v19, %v4270_v14  ;;  %v1204_v22 = vmul.f32 4.5, %v1188_v63 }
 0x1f6   :  { %v1550_v15 = vsub.f32 0.5, %v1534_v49  ;;  %v1381_v21 = vmul.f32 %v1365_v47, %v3705_v52  ;;  %v1445_v23 = vmul.f32 %v1429_v42, %v3708_v20  ;;  %v1522_v56 = vmul.f32 0.5, %v1378_v4  ;;  %v4273_v20 = vld [vmem:[#allocation23_spill] sm:$0xff] }
 0x1f7   :  { %1599 = vst [vmem:[#allocation7 + $0x30] sm:$0xff] %v1583_v3  ;;  %v1506_v43 = vmul.f32 %v1657_v7, %v1490_v31  ;;  %v1236_v38 = vmul.f32 4.5, %v1220_v57  ;;  %v1127_v33 = vsel %vm85_vm4, %v1110_v25, %v4271_v27  ;;  %v1412_v39 = vsub.f32 %v1204_v22, %v4272_v8  ;;  %v4280_v3 = vld [vmem:[#allocation63_spill] sm:$0xff]  ;;  %v4281_v57 = vld [vmem:[#allocation28_spill] sm:$0xff] }
 0x1f8   :  { %v1566_v62 = vmax.f32 %v1550_v15, 0.0  ;;  %1660 = vrcp.f32 %v1445_v23  ;;  %v1160_v6 = vsel %vm86_vm5, %v3714_v61, %v1112_v5  ;;  %v1143_v4 = vadd.f32 %v1127_v33, %v4274_v9 }
 0x1f9   :  { %v1659_v52 = vpop.eup %1658  ;;  %v1538_v16 = vmul.f32 %v1522_v56, %v1506_v43  ;;  %v1348_v44 = vsub.f32 %v1236_v38, %v4273_v20  ;;  %v1176_v24 = vadd.f32 %v1160_v6, %v1144_v53  ;;  %v1428_v1 = vadd.f32 0.0729, %v1412_v39  ;;  %v4282_v39 = vld [vmem:[#allocation43_spill] sm:$0xff] }
 0x1fa   :  { %v1582_v28 = vmin.f32 %v1566_v62, 1.0  ;;  %v1473_v37 = vmul.f32 %v1659_v52, %v1441_v40  ;;  %v1159_v46 = vsel %vm86_vm5, %v4271_v27, %v1110_v25  ;;  %v1521_v0 = vmul.f32 0.5, %v1377_v32  ;;  %v4278_v40 = vld [vmem:[#allocation17_spill] sm:$0xff] }
 0x1fb   :  { %v1554_v41 = vsub.f32 0.5, %v1538_v16  ;;  %v1364_v54 = vadd.f32 0.0729, %v1348_v44  ;;  %v1192_v51 = vadd.f32 %v1176_v24, %v4275_v45  ;;  %v1224_v61 = vsub.f32 %v4275_v45, %v1176_v24 }
 0x1fc   :  { %1598 = vst [vmem:[#allocation7 + $0x28] sm:$0xff] %v1582_v28  ;;  %v1489_v26 = vsub.f32 2.0, %v1473_v37  ;;  %v1444_v5 = vmul.f32 %v1428_v1, %v4276_v60  ;;  %v1175_v48 = vadd.f32 %v1159_v46, %v1143_v4  ;;  %v1336_v50 = vadd.f32 0.0081, %v3858_v10 }
 0x1fd   :  { %v1570_v59 = vmax.f32 %v1554_v41, 0.0  ;;  %v1380_v2 = vmul.f32 %v1364_v54, %v4277_v30  ;;  %v1208_v34 = vmul.f32 4.5, %v1192_v51  ;;  %v1240_v36 = vmul.f32 4.5, %v1224_v61 }
 0x1fe   :  { %v1661_v55 = vpop.eup %1660  ;;  %v1505_v17 = vmul.f32 %v1659_v52, %v1489_v26  ;;  %1662 = vrcp.f32 %v1444_v5  ;;  %v1191_v29 = vadd.f32 %v1175_v48, %v4278_v40  ;;  %v1223_v7 = vsub.f32 %v4278_v40, %v1175_v48 }
 0x1ff   :  { %v1586_v18 = vmin.f32 %v1570_v59, 1.0  ;;  %v1477_v12 = vmul.f32 %v1661_v55, %v1445_v23  ;;  %v1352_v32 = vsub.f32 %v1240_v36, %v3858_v10  ;;  %v1416_v35 = vsub.f32 %v1208_v34, %v4279_v11 }
 0x200   :  { %v1537_v19 = vmul.f32 %v1521_v0, %v1505_v17  ;;  %v1207_v58 = vmul.f32 4.5, %v1191_v29  ;;  %v1239_v49 = vmul.f32 4.5, %v1223_v7  ;;  %v1400_v47 = vadd.f32 0.0081, %v4279_v11 }
 0x201   :  { %1602 = vst [vmem:[#allocation7 + $0x48] sm:$0xff] %v1586_v18  ;;  %v1493_v42 = vsub.f32 2.0, %v1477_v12  ;;  %v1368_v13 = vadd.f32 0.0729, %v1352_v32  ;;  %v1432_v25 = vadd.f32 0.0729, %v1416_v35 }
 0x202   :  { %v1553_v63 = vsub.f32 0.5, %v1537_v19  ;;  %v1351_v31 = vsub.f32 %v1239_v49, %v4280_v3  ;;  %v1415_v14 = vsub.f32 %v1207_v58, %v4281_v57  ;;  %v1399_v53 = vadd.f32 0.0081, %v4281_v57 }
 0x203   :  { %v1509_v15 = vmul.f32 %v1661_v55, %v1493_v42  ;;  %v1525_v10 = vmul.f32 0.5, %v1381_v21  ;;  %v1384_v23 = vmul.f32 %v1368_v13, %v1336_v50  ;;  %v1448_v56 = vmul.f32 %v1432_v25, %v1400_v47 }
 0x204   :  { %v1663_v22 = vpop.eup %1662  ;;  %v1569_v43 = vmax.f32 %v1553_v63, 0.0  ;;  %v1367_v38 = vadd.f32 0.0729, %v1351_v31  ;;  %v1431_v27 = vadd.f32 0.0729, %v1415_v14  ;;  %v1524_v21 = vmul.f32 0.5, %v1380_v2 }
 0x205   :  { %v1541_v33 = vmul.f32 %v1525_v10, %v1509_v15  ;;  %v1476_v62 = vmul.f32 %v1663_v22, %v1444_v5  ;;  %1664 = vrcp.f32 %v1448_v56  ;;  %v1528_v26 = vmul.f32 0.5, %v1384_v23 }
 0x206   :  { %v1585_v8 = vmin.f32 %v1569_v43, 1.0  ;;  %v1383_v6 = vmul.f32 %v1367_v38, %v4282_v39  ;;  %v1447_v52 = vmul.f32 %v1431_v27, %v1399_v53 }
 0x207   :  { %v1557_v16 = vsub.f32 0.5, %v1541_v33  ;;  %v1492_v20 = vsub.f32 2.0, %v1476_v62 }
 0x208   :  { %1601 = vst [vmem:[#allocation7 + $0x40] sm:$0xff] %v1585_v8  ;;  %1666 = vrcp.f32 %v1447_v52  ;;  %v1527_v48 = vmul.f32 0.5, %v1383_v6 }
 0x209   :  { %v1573_v44 = vmax.f32 %v1557_v16, 0.0  ;;  %v1508_v24 = vmul.f32 %v1663_v22, %v1492_v20 }
 0x20b   :  { %v1589_v9 = vmin.f32 %v1573_v44, 1.0  ;;  %v1540_v4 = vmul.f32 %v1524_v21, %v1508_v24  ;;  %v1665_v28 = vpop.eup %1664 }
 0x20c   :  { %v1480_v1 = vmul.f32 %v1665_v28, %v1448_v56 }
 0x20d   :  { %1605 = vst [vmem:[#allocation7 + $0x60] sm:$0xff] %v1589_v9  ;;  %v1556_v37 = vsub.f32 0.5, %v1540_v4 }
 0x20e   :  { %v1667_v46 = vpop.eup %1666  ;;  %v1496_v54 = vsub.f32 2.0, %v1480_v1 }
 0x20f   :  { %v1572_v41 = vmax.f32 %v1556_v37, 0.0  ;;  %v1479_v45 = vmul.f32 %v1667_v46, %v1447_v52 }
 0x210   :  { %v1512_v61 = vmul.f32 %v1665_v28, %v1496_v54 }
 0x211   :  { %v1588_v51 = vmin.f32 %v1572_v41, 1.0  ;;  %v1495_v0 = vsub.f32 2.0, %v1479_v45 }
 0x212   :  { %v1544_v60 = vmul.f32 %v1528_v26, %v1512_v61 }
 0x213   :  { %1604 = vst [vmem:[#allocation7 + $0x58] sm:$0xff] %v1588_v51  ;;  %v1511_v5 = vmul.f32 %v1667_v46, %v1495_v0 }
 0x214   :  { %v1560_v59 = vsub.f32 0.5, %v1544_v60 }
 0x215   :  { %v1543_v30 = vmul.f32 %v1527_v48, %v1511_v5 }
 0x216   :  { %v1576_v2 = vmax.f32 %v1560_v59, 0.0 }
 0x217   :  { %v1559_v34 = vsub.f32 0.5, %v1543_v30 }
 0x218   :  { %v1592_v36 = vmin.f32 %v1576_v2, 1.0 }
 0x219   :  { %v1575_v55 = vmax.f32 %v1559_v34, 0.0 }
 0x21a   :  { %1608 = vst [vmem:[#allocation7 + $0x78] sm:$0xff] %v1592_v36 }
 0x21b   :  { %v1591_v17 = vmin.f32 %v1575_v55, 1.0 }
 0x21d   :  { %1607 = vst [vmem:[#allocation7 + $0x70] sm:$0xff] %v1591_v17 }
 0x21e   :  { %1621 = dma.vmem_to_hbm [thread:$0]  %s1614_s22, 2048, %s1616_s25, [#allocation4], %s1768_s17, %s1768_s17, %s1769_s18  }
 0x21f   :  { %1765 = dma.done.wait [#allocation4], 2048  }
 0x220   :  { %1766 = vsyncadd [#allocation4], 4294965248 }
 0x221   :  { %1626 = vsyncpa [#allocation3], 1 }
 0x222   :  { %1627 = vsyncpa [#allocation6], 1 }
 0x223   :  { %1628 = vsyncpa [#allocation4], 1 }

</bundles_post_ra>
